<compile_context>
chip_gen: v7x
topology: tpu7x:2x2x1
jax: 0.10.0
libtpu: 0.0.40
codegen_flags: <defaults>
</compile_context>

<pallas_src>
import functools

import jax
import jax.numpy as jnp
from jax import lax
from jax.experimental import pallas as pl
from jax.experimental.pallas import tpu as pltpu

CP = 128  # lane-padded channel width used for the second half of the block


# ----------------------------------------------------------------------------
# In-kernel helpers (traced inside the Pallas body)
# ----------------------------------------------------------------------------
def _conv3x3(xpad, w_ref, H, W):
    """3x3 / pad-1 conv as 3 accumulated MXU matmuls of K = 3*C.

    xpad : (H+2, W+2, C) spatially padded activation (f32).
    w_ref: (3, 3*C, CP) bf16 weights, one (3*C, CP) slab per vertical tap kh.
    Returns (H*W, CP) f32 accumulator.
    """
    C = xpad.shape[-1]
    # One 3-tap horizontal channel concat (instead of the old 9-way im2col).
    x3 = jnp.concatenate(
        [xpad[:, 0:W, :], xpad[:, 1:W + 1, :], xpad[:, 2:W + 2, :]],
        axis=-1).astype(jnp.bfloat16)                     # (H+2, W, 3C)
    acc = jnp.zeros((H * W, CP), jnp.float32)
    for kh in range(3):                                    # free leading-dim slices
        lhs = x3[kh:kh + H].reshape(H * W, 3 * C)          # (H*W, 3C) bf16
        acc = acc + jnp.dot(lhs, w_ref[kh],
                            preferred_element_type=jnp.float32)
    return acc


# ----------------------------------------------------------------------------
# Fused BasicBlock kernel (one grid step == one image)
# ----------------------------------------------------------------------------
def _seblock_kernel(x_ref, w1_ref, w2_ref, fcw_ref, b_ref, y_ref, *, H, W, Co):
    xp = x_ref[0]                                          # (H+2, W+2, Ci) f32

    # conv1 + fused 1x1 shortcut: lanes [0,Co) = conv1+bn1, [Co,2Co) = shortcut.
    a1f = _conv3x3(xp, w1_ref, H, W) + b_ref[0]            # (H*W, CP) f32

    lane = lax.broadcasted_iota(jnp.int32, (1, CP), 1)
    sc = jnp.where((lane >= Co) & (lane < 2 * Co), a1f, 0.0)   # shortcut, no ReLU

    # conv2 input: ReLU'd conv1 channels, zero-padded spatially in VMEM values
    # (vertical pad is a cheap major-dim concat; horizontal pad feeds the
    # 3-tap concat inside _conv3x3).
    a1 = jnp.maximum(a1f[:, :Co], 0.0).reshape(H, W, Co)
    zc = jnp.zeros((H, 1, Co), a1.dtype)
    zr = jnp.zeros((1, W + 2, Co), a1.dtype)
    a1p = jnp.concatenate(
        [zr, jnp.concatenate([zc, a1, zc], axis=1), zr], axis=0)
    out2 = _conv3x3(a1p, w2_ref, H, W) + b_ref[1]          # data in lanes [Co,2Co)

    # Squeeze-excite: GAP -> fc1 -> ReLU -> fc2 -> sigmoid (lanes [Co,2Co)).
    pooled = jnp.sum(out2, axis=0, keepdims=True) * (1.0 / (H * W))   # (1, CP)
    h = jnp.dot(pooled.astype(jnp.bfloat16), fcw_ref[0],
                preferred_element_type=jnp.float32) + b_ref[2]
    h = jnp.maximum(h, 0.0)
    s = jax.nn.sigmoid(jnp.dot(h.astype(jnp.bfloat16), fcw_ref[1],
                               preferred_element_type=jnp.float32) + b_ref[3])

    # channel rescale + residual add + final ReLU; lane-dense 128-wide store.
    y_ref[0] = jnp.maximum(out2 * s + sc, 0.0)


# ----------------------------------------------------------------------------
# Wrapper: BN fold, weight packing (bf16), spatial pre-pad, single pallas_call
# ----------------------------------------------------------------------------
def basic_block_forward(x_nchw, params, *, stride=1):
    # TODO(synk): stride > 1 downsampling (strided taps) not implemented; this
    # exercises the stride=1, projection-shortcut BasicBlock.
    # TODO(synk): before scaling past toy spatial sizes, add an H-row grid
    # axis (row tiles + halo, two-phase SE reduction) so whole-image blocks
    # fit v7x's 64 MiB VMEM and both v7x TensorCores stay busy for any N.
    assert stride == 1
    N, Ci, H, W = x_nchw.shape
    Co = params["conv1_w"].shape[-1]
    Cmid = params["fc1_w"].shape[-1]
    assert 2 * Co <= CP and Cmid <= CP

    x = jnp.transpose(x_nchw, (0, 2, 3, 1)).astype(jnp.float32)   # NCHW -> NHWC
    xp = jnp.pad(x, ((0, 0), (1, 1), (1, 1), (0, 0)))             # spatial pre-pad

    # ---- fold BN + pack weights.  Invariant: everything outside the
    # documented active lane/row ranges is EXACTLY zero. ----
    w1c = jnp.zeros((3, 3 * Ci, CP), jnp.float32)
    w1c = w1c.at[:, :, :Co].set(
        (params["conv1_w"] * params["bn1_scale"]).reshape(3, 3 * Ci, Co))
    w1c = w1c.at[1, Ci:2 * Ci, Co:2 * Co].set(
        params["sc_w"] * params["sc_scale"])     # fused 1x1 shortcut (center tap)

    w2c = jnp.zeros((3, 3 * Co, CP), jnp.float32)
    w2c = w2c.at[:, :, Co:2 * Co].set(
        (params["conv2_w"] * params["bn2_scale"]).reshape(3, 3 * Co, Co))

    fcw = jnp.zeros((2, CP, CP), jnp.float32)
    fcw = fcw.at[0, Co:2 * Co, :Cmid].set(params["fc1_w"])
    fcw = fcw.at[1, :Cmid, Co:2 * Co].set(params["fc2_w"])

    bias = jnp.zeros((4, 1, CP), jnp.float32)
    bias = bias.at[0, 0, :Co].set(params["bn1_bias"])
    bias = bias.at[0, 0, Co:2 * Co].set(params["sc_bias"])
    bias = bias.at[1, 0, Co:2 * Co].set(params["bn2_bias"])
    bias = bias.at[2, 0, :Cmid].set(params["fc1_b"])
    bias = bias.at[3, 0, Co:2 * Co].set(params["fc2_b"])

    w1c = w1c.astype(jnp.bfloat16)
    w2c = w2c.astype(jnp.bfloat16)
    fcw = fcw.astype(jnp.bfloat16)

    kern = functools.partial(_seblock_kernel, H=H, W=W, Co=Co)
    yp = pl.pallas_call(
        kern,
        out_shape=jax.ShapeDtypeStruct((N, H * W, CP), jnp.float32),
        grid_spec=pltpu.PrefetchScalarGridSpec(
            num_scalar_prefetch=0,
            grid=(N,),
            in_specs=[
                pl.BlockSpec((1, H + 2, W + 2, Ci), lambda n: (n, 0, 0, 0)),
                pl.BlockSpec((3, 3 * Ci, CP), lambda n: (0, 0, 0)),
                pl.BlockSpec((3, 3 * Co, CP), lambda n: (0, 0, 0)),
                pl.BlockSpec((2, CP, CP), lambda n: (0, 0, 0)),
                pl.BlockSpec((4, 1, CP), lambda n: (0, 0, 0)),
            ],
            out_specs=pl.BlockSpec((1, H * W, CP), lambda n: (n, 0, 0)),
        ),
        compiler_params=pltpu.CompilerParams(
            dimension_semantics=("parallel",),
            vmem_limit_bytes=32 * 1024 * 1024,
        ),
    )(xp, w1c, w2c, fcw, bias)

    y = yp.reshape(N, H, W, CP)[..., Co:2 * Co]            # real channels only
    return jnp.transpose(y, (0, 3, 1, 2))                  # NHWC -> NCHW


# ----------------------------------------------------------------------------
# Pure-JAX reference (full f32, for correctness checking)
# ----------------------------------------------------------------------------
def _ref_forward(x_nchw, params):
    x = jnp.transpose(x_nchw, (0, 2, 3, 1)).astype(jnp.float32)
    dn = lax.conv_dimension_numbers(x.shape, params["conv1_w"].shape,
                                    ("NHWC", "HWIO", "NHWC"))

    def conv3(x, w):
        return lax.conv_general_dilated(x, w, (1, 1), ((1, 1), (1, 1)),
                                        dimension_numbers=dn)

    out = conv3(x, params["conv1_w"]) * params["bn1_scale"] + params["bn1_bias"]
    out = jnp.maximum(out, 0.0)
    out = conv3(out, params["conv2_w"]) * params["bn2_scale"] + params["bn2_bias"]
    pooled = jnp.mean(out, axis=(1, 2))
    h = jnp.maximum(pooled @ params["fc1_w"] + params["fc1_b"], 0.0)
    s = jax.nn.sigmoid(h @ params["fc2_w"] + params["fc2_b"])
    sc = jnp.einsum("nhwc,cd->nhwd", x, params["sc_w"]) * params["sc_scale"] \
         + params["sc_bias"]
    y = jnp.maximum(out * s[:, None, None, :] + sc, 0.0)
    return jnp.transpose(y, (0, 3, 1, 2))


def _fold_bn(gamma, beta, mean, var, eps=1e-5):
    scale = gamma / jnp.sqrt(var + eps)
    return scale, beta - mean * scale


def init_params(key, in_planes, planes):
    ks = jax.random.split(key, 12)
    p = {}
    p["conv1_w"] = 0.1 * jax.random.normal(ks[0], (3, 3, in_planes, planes),
                                           jnp.float32)
    p["conv2_w"] = 0.1 * jax.random.normal(ks[1], (3, 3, planes, planes),
                                           jnp.float32)
    p["sc_w"] = 0.1 * jax.random.normal(ks[2], (in_planes, planes), jnp.float32)
    for name, k in (("bn1", ks[3]), ("bn2", ks[4]), ("sc", ks[5])):
        kg, kb, km, kv = jax.random.split(k, 4)
        gamma = 0.5 + jax.random.uniform(kg, (planes,), jnp.float32)
        beta = 0.1 * jax.random.normal(kb, (planes,), jnp.float32)
        mean = 0.1 * jax.random.normal(km, (planes,), jnp.float32)
        var = 0.5 + jax.random.uniform(kv, (planes,), jnp.float32)
        s, b = _fold_bn(gamma, beta, mean, var)
        p[name + "_scale"], p[name + "_bias"] = s, b
    cmid = planes // 16
    p["fc1_w"] = 0.2 * jax.random.normal(ks[6], (planes, cmid), jnp.float32)
    p["fc1_b"] = 0.1 * jax.random.normal(ks[7], (cmid,), jnp.float32)
    p["fc2_w"] = 0.2 * jax.random.normal(ks[8], (cmid, planes), jnp.float32)
    p["fc2_b"] = 0.1 * jax.random.normal(ks[9], (planes,), jnp.float32)
    return p


if __name__ == "__main__":
    N, in_planes, planes, H, W = 2, 16, 32, 16, 16
    key = jax.random.PRNGKey(0)
    kx, kp = jax.random.split(key)
    x = jax.random.normal(kx, (N, in_planes, H, W), jnp.float32)   # NCHW input
    params = init_params(kp, in_planes, planes)

    y = jax.block_until_ready(basic_block_forward(x, params, stride=1))
    y_ref = jax.block_until_ready(_ref_forward(x, params))

    assert y.shape == (N, planes, H, W), y.shape
    # bf16 MXU operands (f32 accumulate) => looser tolerance than the f32 ref.
    max_err = float(jnp.max(jnp.abs(y - y_ref)))
    assert jnp.allclose(y, y_ref, atol=8e-2, rtol=4e-2), max_err
    print("KERNEL_OK")
</pallas_src>

<mosaic_0001>
module attributes {stable_mosaic.version = 11 : i64} {
  func.func @_seblock_kernel(%arg0: i32, %arg1: memref<1x18x18x16xf32, #tpu.memory_space<vmem>>, %arg2: memref<3x48x128xbf16, #tpu.memory_space<vmem>>, %arg3: memref<3x96x128xbf16, #tpu.memory_space<vmem>>, %arg4: memref<2x128x128xbf16, #tpu.memory_space<vmem>>, %arg5: memref<4x1x128xf32, #tpu.memory_space<vmem>>, %arg6: memref<1x256x128xf32, #tpu.memory_space<vmem>>) attributes {dimension_semantics = [#tpu.dimension_semantics<parallel>], iteration_bounds = array<i64: 2>, scalar_prefetch = 0 : i64, scratch_operands = 0 : i64, tpu.core_type = #tpu.core_type<tc>, window_params = [{transform_indices = @transform_0, window_bounds = array<i64: 1, 18, 18, 16>}, {pipeline_mode = #tpu.pipeline_mode<synchronous>, transform_indices = @transform_1, window_bounds = array<i64: 3, 48, 128>}, {pipeline_mode = #tpu.pipeline_mode<synchronous>, transform_indices = @transform_2, window_bounds = array<i64: 3, 96, 128>}, {pipeline_mode = #tpu.pipeline_mode<synchronous>, transform_indices = @transform_3, window_bounds = array<i64: 2, 128, 128>}, {pipeline_mode = #tpu.pipeline_mode<synchronous>, transform_indices = @transform_4, window_bounds = array<i64: 4, 1, 128>}, {transform_indices = @transform_5, window_bounds = array<i64: 1, 256, 128>}]} {
    %c0 = arith.constant 0 : index
    %c0_0 = arith.constant 0 : index
    %c0_1 = arith.constant 0 : index
    %c0_2 = arith.constant 0 : index
    %0 = vector.load %arg1[%c0, %c0_0, %c0_1, %c0_2] : memref<1x18x18x16xf32, #tpu.memory_space<vmem>>, vector<1x18x18x16xf32>
    %1 = vector.shape_cast %0 : vector<1x18x18x16xf32> to vector<18x18x16xf32>
    %2 = vector.extract_strided_slice %1 {offsets = [0, 0, 0], sizes = [18, 16, 16], strides = [1, 1, 1]} : vector<18x18x16xf32> to vector<18x16x16xf32>
    %3 = vector.extract_strided_slice %1 {offsets = [0, 1, 0], sizes = [18, 16, 16], strides = [1, 1, 1]} : vector<18x18x16xf32> to vector<18x16x16xf32>
    %4 = vector.extract_strided_slice %1 {offsets = [0, 2, 0], sizes = [18, 16, 16], strides = [1, 1, 1]} : vector<18x18x16xf32> to vector<18x16x16xf32>
    %5 = tpu.concatenate %2, %3, %4 in 2 : vector<18x16x16xf32>, vector<18x16x16xf32>, vector<18x16x16xf32> -> vector<18x16x48xf32>
    %6 = arith.truncf %5 : vector<18x16x48xf32> to vector<18x16x48xbf16>
    %cst = arith.constant 0.000000e+00 : f32
    %7 = vector.broadcast %cst : f32 to vector<256x128xf32>
    %8 = vector.extract_strided_slice %6 {offsets = [0, 0, 0], sizes = [16, 16, 48], strides = [1, 1, 1]} : vector<18x16x48xbf16> to vector<16x16x48xbf16>
    %9 = vector.shape_cast %8 : vector<16x16x48xbf16> to vector<256x48xbf16>
    %c0_3 = arith.constant 0 : index
    %c0_4 = arith.constant 0 : index
    %c0_5 = arith.constant 0 : index
    %10 = vector.load %arg2[%c0_3, %c0_4, %c0_5] : memref<3x48x128xbf16, #tpu.memory_space<vmem>>, vector<1x48x128xbf16>
    %11 = vector.shape_cast %10 : vector<1x48x128xbf16> to vector<48x128xbf16>
    %cst_6 = arith.constant dense<0.000000e+00> : vector<256x128xf32>
    %12 = tpu.matmul %9, %11, %cst_6 {dimension_numbers = #tpu.dot_dimension_numbers<[1], [0], [0], [1], [0, 0, 1, 1], [], []>} : vector<256x48xbf16>, vector<48x128xbf16>, vector<256x128xf32> -> vector<256x128xf32>
    %13 = arith.addf %7, %12 : vector<256x128xf32>
    %14 = vector.extract_strided_slice %6 {offsets = [1, 0, 0], sizes = [16, 16, 48], strides = [1, 1, 1]} : vector<18x16x48xbf16> to vector<16x16x48xbf16>
    %15 = vector.shape_cast %14 : vector<16x16x48xbf16> to vector<256x48xbf16>
    %c1 = arith.constant 1 : index
    %c0_7 = arith.constant 0 : index
    %c0_8 = arith.constant 0 : index
    %16 = vector.load %arg2[%c1, %c0_7, %c0_8] : memref<3x48x128xbf16, #tpu.memory_space<vmem>>, vector<1x48x128xbf16>
    %17 = vector.shape_cast %16 : vector<1x48x128xbf16> to vector<48x128xbf16>
    %cst_9 = arith.constant dense<0.000000e+00> : vector<256x128xf32>
    %18 = tpu.matmul %15, %17, %cst_9 {dimension_numbers = #tpu.dot_dimension_numbers<[1], [0], [0], [1], [0, 0, 1, 1], [], []>} : vector<256x48xbf16>, vector<48x128xbf16>, vector<256x128xf32> -> vector<256x128xf32>
    %19 = arith.addf %13, %18 : vector<256x128xf32>
    %20 = vector.extract_strided_slice %6 {offsets = [2, 0, 0], sizes = [16, 16, 48], strides = [1, 1, 1]} : vector<18x16x48xbf16> to vector<16x16x48xbf16>
    %21 = vector.shape_cast %20 : vector<16x16x48xbf16> to vector<256x48xbf16>
    %c2 = arith.constant 2 : index
    %c0_10 = arith.constant 0 : index
    %c0_11 = arith.constant 0 : index
    %22 = vector.load %arg2[%c2, %c0_10, %c0_11] : memref<3x48x128xbf16, #tpu.memory_space<vmem>>, vector<1x48x128xbf16>
    %23 = vector.shape_cast %22 : vector<1x48x128xbf16> to vector<48x128xbf16>
    %cst_12 = arith.constant dense<0.000000e+00> : vector<256x128xf32>
    %24 = tpu.matmul %21, %23, %cst_12 {dimension_numbers = #tpu.dot_dimension_numbers<[1], [0], [0], [1], [0, 0, 1, 1], [], []>} : vector<256x48xbf16>, vector<48x128xbf16>, vector<256x128xf32> -> vector<256x128xf32>
    %25 = arith.addf %19, %24 : vector<256x128xf32>
    %c0_13 = arith.constant 0 : index
    %c0_14 = arith.constant 0 : index
    %c0_15 = arith.constant 0 : index
    %26 = vector.load %arg5[%c0_13, %c0_14, %c0_15] : memref<4x1x128xf32, #tpu.memory_space<vmem>>, vector<1x1x128xf32>
    %27 = vector.shape_cast %26 : vector<1x1x128xf32> to vector<1x128xf32>
    %28 = vector.broadcast %27 : vector<1x128xf32> to vector<256x128xf32>
    %29 = arith.addf %25, %28 : vector<256x128xf32>
    %30 = tpu.iota {dimensions = array<i32: 1>} : vector<1x128xi32>
    %c32_i32 = arith.constant 32 : i32
    %31 = vector.broadcast %c32_i32 : i32 to vector<1x128xi32>
    %32 = arith.cmpi sge, %30, %31 : vector<1x128xi32>
    %c64_i32 = arith.constant 64 : i32
    %33 = vector.broadcast %c64_i32 : i32 to vector<1x128xi32>
    %34 = arith.cmpi slt, %30, %33 : vector<1x128xi32>
    %35 = arith.andi %32, %34 : vector<1x128xi1>
    %cst_16 = arith.constant 0.000000e+00 : f32
    %36 = vector.shape_cast %35 : vector<1x128xi1> to vector<1x128xi1>
    %37 = vector.broadcast %36 : vector<1x128xi1> to vector<256x128xi1>
    %38 = vector.broadcast %cst_16 : f32 to vector<256x128xf32>
    %39 = arith.select %37, %29, %38 : vector<256x128xi1>, vector<256x128xf32>
    %40 = vector.extract_strided_slice %29 {offsets = [0, 0], sizes = [256, 32], strides = [1, 1]} : vector<256x128xf32> to vector<256x32xf32>
    %cst_17 = arith.constant 0.000000e+00 : f32
    %41 = vector.broadcast %cst_17 : f32 to vector<256x32xf32>
    %42 = arith.maximumf %40, %41 : vector<256x32xf32>
    %43 = vector.shape_cast %42 : vector<256x32xf32> to vector<16x16x32xf32>
    %cst_18 = arith.constant 0.000000e+00 : f32
    %44 = vector.broadcast %cst_18 : f32 to vector<16x1x32xf32>
    %cst_19 = arith.constant 0.000000e+00 : f32
    %45 = vector.broadcast %cst_19 : f32 to vector<1x18x32xf32>
    %46 = tpu.concatenate %44, %43, %44 in 1 : vector<16x1x32xf32>, vector<16x16x32xf32>, vector<16x1x32xf32> -> vector<16x18x32xf32>
    %47 = tpu.concatenate %45, %46, %45 in 0 : vector<1x18x32xf32>, vector<16x18x32xf32>, vector<1x18x32xf32> -> vector<18x18x32xf32>
    %48 = vector.extract_strided_slice %47 {offsets = [0, 0, 0], sizes = [18, 16, 32], strides = [1, 1, 1]} : vector<18x18x32xf32> to vector<18x16x32xf32>
    %49 = vector.extract_strided_slice %47 {offsets = [0, 1, 0], sizes = [18, 16, 32], strides = [1, 1, 1]} : vector<18x18x32xf32> to vector<18x16x32xf32>
    %50 = vector.extract_strided_slice %47 {offsets = [0, 2, 0], sizes = [18, 16, 32], strides = [1, 1, 1]} : vector<18x18x32xf32> to vector<18x16x32xf32>
    %51 = tpu.concatenate %48, %49, %50 in 2 : vector<18x16x32xf32>, vector<18x16x32xf32>, vector<18x16x32xf32> -> vector<18x16x96xf32>
    %52 = arith.truncf %51 : vector<18x16x96xf32> to vector<18x16x96xbf16>
    %cst_20 = arith.constant 0.000000e+00 : f32
    %53 = vector.broadcast %cst_20 : f32 to vector<256x128xf32>
    %54 = vector.extract_strided_slice %52 {offsets = [0, 0, 0], sizes = [16, 16, 96], strides = [1, 1, 1]} : vector<18x16x96xbf16> to vector<16x16x96xbf16>
    %55 = vector.shape_cast %54 : vector<16x16x96xbf16> to vector<256x96xbf16>
    %c0_21 = arith.constant 0 : index
    %c0_22 = arith.constant 0 : index
    %c0_23 = arith.constant 0 : index
    %56 = vector.load %arg3[%c0_21, %c0_22, %c0_23] : memref<3x96x128xbf16, #tpu.memory_space<vmem>>, vector<1x96x128xbf16>
    %57 = vector.shape_cast %56 : vector<1x96x128xbf16> to vector<96x128xbf16>
    %cst_24 = arith.constant dense<0.000000e+00> : vector<256x128xf32>
    %58 = tpu.matmul %55, %57, %cst_24 {dimension_numbers = #tpu.dot_dimension_numbers<[1], [0], [0], [1], [0, 0, 1, 1], [], []>} : vector<256x96xbf16>, vector<96x128xbf16>, vector<256x128xf32> -> vector<256x128xf32>
    %59 = arith.addf %53, %58 : vector<256x128xf32>
    %60 = vector.extract_strided_slice %52 {offsets = [1, 0, 0], sizes = [16, 16, 96], strides = [1, 1, 1]} : vector<18x16x96xbf16> to vector<16x16x96xbf16>
    %61 = vector.shape_cast %60 : vector<16x16x96xbf16> to vector<256x96xbf16>
    %c1_25 = arith.constant 1 : index
    %c0_26 = arith.constant 0 : index
    %c0_27 = arith.constant 0 : index
    %62 = vector.load %arg3[%c1_25, %c0_26, %c0_27] : memref<3x96x128xbf16, #tpu.memory_space<vmem>>, vector<1x96x128xbf16>
    %63 = vector.shape_cast %62 : vector<1x96x128xbf16> to vector<96x128xbf16>
    %cst_28 = arith.constant dense<0.000000e+00> : vector<256x128xf32>
    %64 = tpu.matmul %61, %63, %cst_28 {dimension_numbers = #tpu.dot_dimension_numbers<[1], [0], [0], [1], [0, 0, 1, 1], [], []>} : vector<256x96xbf16>, vector<96x128xbf16>, vector<256x128xf32> -> vector<256x128xf32>
    %65 = arith.addf %59, %64 : vector<256x128xf32>
    %66 = vector.extract_strided_slice %52 {offsets = [2, 0, 0], sizes = [16, 16, 96], strides = [1, 1, 1]} : vector<18x16x96xbf16> to vector<16x16x96xbf16>
    %67 = vector.shape_cast %66 : vector<16x16x96xbf16> to vector<256x96xbf16>
    %c2_29 = arith.constant 2 : index
    %c0_30 = arith.constant 0 : index
    %c0_31 = arith.constant 0 : index
    %68 = vector.load %arg3[%c2_29, %c0_30, %c0_31] : memref<3x96x128xbf16, #tpu.memory_space<vmem>>, vector<1x96x128xbf16>
    %69 = vector.shape_cast %68 : vector<1x96x128xbf16> to vector<96x128xbf16>
    %cst_32 = arith.constant dense<0.000000e+00> : vector<256x128xf32>
    %70 = tpu.matmul %67, %69, %cst_32 {dimension_numbers = #tpu.dot_dimension_numbers<[1], [0], [0], [1], [0, 0, 1, 1], [], []>} : vector<256x96xbf16>, vector<96x128xbf16>, vector<256x128xf32> -> vector<256x128xf32>
    %71 = arith.addf %65, %70 : vector<256x128xf32>
    %c1_33 = arith.constant 1 : index
    %c0_34 = arith.constant 0 : index
    %c0_35 = arith.constant 0 : index
    %72 = vector.load %arg5[%c1_33, %c0_34, %c0_35] : memref<4x1x128xf32, #tpu.memory_space<vmem>>, vector<1x1x128xf32>
    %73 = vector.shape_cast %72 : vector<1x1x128xf32> to vector<1x128xf32>
    %74 = vector.broadcast %73 : vector<1x128xf32> to vector<256x128xf32>
    %75 = arith.addf %71, %74 : vector<256x128xf32>
    %cst_36 = arith.constant dense<0.000000e+00> : vector<128xf32>
    %76 = vector.multi_reduction <add>, %75, %cst_36 [0] : vector<256x128xf32> to vector<128xf32>
    %77 = vector.shape_cast %76 : vector<128xf32> to vector<1x128xf32>
    %cst_37 = arith.constant 3.906250e-03 : f32
    %78 = vector.broadcast %cst_37 : f32 to vector<1x128xf32>
    %79 = arith.mulf %77, %78 : vector<1x128xf32>
    %80 = arith.truncf %79 : vector<1x128xf32> to vector<1x128xbf16>
    %c0_38 = arith.constant 0 : index
    %c0_39 = arith.constant 0 : index
    %c0_40 = arith.constant 0 : index
    %81 = vector.load %arg4[%c0_38, %c0_39, %c0_40] : memref<2x128x128xbf16, #tpu.memory_space<vmem>>, vector<1x128x128xbf16>
    %82 = vector.shape_cast %81 : vector<1x128x128xbf16> to vector<128x128xbf16>
    %cst_41 = arith.constant dense<0.000000e+00> : vector<1x128xf32>
    %83 = tpu.matmul %80, %82, %cst_41 {dimension_numbers = #tpu.dot_dimension_numbers<[1], [0], [0], [1], [0, 0, 1, 1], [], []>} : vector<1x128xbf16>, vector<128x128xbf16>, vector<1x128xf32> -> vector<1x128xf32>
    %c2_42 = arith.constant 2 : index
    %c0_43 = arith.constant 0 : index
    %c0_44 = arith.constant 0 : index
    %84 = vector.load %arg5[%c2_42, %c0_43, %c0_44] : memref<4x1x128xf32, #tpu.memory_space<vmem>>, vector<1x1x128xf32>
    %85 = vector.shape_cast %84 : vector<1x1x128xf32> to vector<1x128xf32>
    %86 = arith.addf %83, %85 : vector<1x128xf32>
    %cst_45 = arith.constant 0.000000e+00 : f32
    %87 = vector.broadcast %cst_45 : f32 to vector<1x128xf32>
    %88 = arith.maximumf %86, %87 : vector<1x128xf32>
    %89 = arith.truncf %88 : vector<1x128xf32> to vector<1x128xbf16>
    %c1_46 = arith.constant 1 : index
    %c0_47 = arith.constant 0 : index
    %c0_48 = arith.constant 0 : index
    %90 = vector.load %arg4[%c1_46, %c0_47, %c0_48] : memref<2x128x128xbf16, #tpu.memory_space<vmem>>, vector<1x128x128xbf16>
    %91 = vector.shape_cast %90 : vector<1x128x128xbf16> to vector<128x128xbf16>
    %cst_49 = arith.constant dense<0.000000e+00> : vector<1x128xf32>
    %92 = tpu.matmul %89, %91, %cst_49 {dimension_numbers = #tpu.dot_dimension_numbers<[1], [0], [0], [1], [0, 0, 1, 1], [], []>} : vector<1x128xbf16>, vector<128x128xbf16>, vector<1x128xf32> -> vector<1x128xf32>
    %c3 = arith.constant 3 : index
    %c0_50 = arith.constant 0 : index
    %c0_51 = arith.constant 0 : index
    %93 = vector.load %arg5[%c3, %c0_50, %c0_51] : memref<4x1x128xf32, #tpu.memory_space<vmem>>, vector<1x1x128xf32>
    %94 = vector.shape_cast %93 : vector<1x1x128xf32> to vector<1x128xf32>
    %95 = arith.addf %92, %94 : vector<1x128xf32>
    %96 = arith.negf %95 : vector<1x128xf32>
    %97 = math.exp %96 : vector<1x128xf32>
    %cst_52 = arith.constant 1.000000e+00 : f32
    %98 = vector.broadcast %cst_52 : f32 to vector<1x128xf32>
    %99 = arith.addf %98, %97 : vector<1x128xf32>
    %100 = arith.divf %98, %99 : vector<1x128xf32>
    %101 = vector.broadcast %100 : vector<1x128xf32> to vector<256x128xf32>
    %102 = arith.mulf %75, %101 : vector<256x128xf32>
    %103 = arith.addf %102, %39 : vector<256x128xf32>
    %cst_53 = arith.constant 0.000000e+00 : f32
    %104 = vector.broadcast %cst_53 : f32 to vector<256x128xf32>
    %105 = arith.maximumf %103, %104 : vector<256x128xf32>
    %c0_54 = arith.constant 0 : index
    %c0_55 = arith.constant 0 : index
    %c0_56 = arith.constant 0 : index
    %106 = vector.load %arg6[%c0_54, %c0_55, %c0_56] : memref<1x256x128xf32, #tpu.memory_space<vmem>>, vector<1x256x128xf32>
    %107 = vector.shape_cast %106 : vector<1x256x128xf32> to vector<256x128xf32>
    %108 = vector.shape_cast %105 : vector<256x128xf32> to vector<1x256x128xf32>
    tpu.vector_store %arg6[%c0_54, %c0_55, %c0_56], %108 {strides = array<i32>} : memref<1x256x128xf32, #tpu.memory_space<vmem>>, vector<1x256x128xf32>,
    return
  }
  func.func @transform_0(%arg0: i32) -> (i32, i32, i32, i32) {
    %c0_i32 = arith.constant 0 : i32
    %c0_i32_0 = arith.constant 0 : i32
    %c0_i32_1 = arith.constant 0 : i32
    %c0_i32_2 = arith.constant 0 : i32
    return %arg0, %c0_i32, %c0_i32_0, %c0_i32_1 : i32, i32, i32, i32
  }
  func.func @transform_1(%arg0: i32) -> (i32, i32, i32) {
    %c0_i32 = arith.constant 0 : i32
    %c0_i32_0 = arith.constant 0 : i32
    %c0_i32_1 = arith.constant 0 : i32
    %c0_i32_2 = arith.constant 0 : i32
    return %c0_i32, %c0_i32_0, %c0_i32_1 : i32, i32, i32
  }
  func.func @transform_2(%arg0: i32) -> (i32, i32, i32) {
    %c0_i32 = arith.constant 0 : i32
    %c0_i32_0 = arith.constant 0 : i32
    %c0_i32_1 = arith.constant 0 : i32
    %c0_i32_2 = arith.constant 0 : i32
    return %c0_i32, %c0_i32_0, %c0_i32_1 : i32, i32, i32
  }
  func.func @transform_3(%arg0: i32) -> (i32, i32, i32) {
    %c0_i32 = arith.constant 0 : i32
    %c0_i32_0 = arith.constant 0 : i32
    %c0_i32_1 = arith.constant 0 : i32
    %c0_i32_2 = arith.constant 0 : i32
    return %c0_i32, %c0_i32_0, %c0_i32_1 : i32, i32, i32
  }
  func.func @transform_4(%arg0: i32) -> (i32, i32, i32) {
    %c0_i32 = arith.constant 0 : i32
    %c0_i32_0 = arith.constant 0 : i32
    %c0_i32_1 = arith.constant 0 : i32
    %c0_i32_2 = arith.constant 0 : i32
    return %c0_i32, %c0_i32_0, %c0_i32_1 : i32, i32, i32
  }
  func.func @transform_5(%arg0: i32) -> (i32, i32, i32) {
    %c0_i32 = arith.constant 0 : i32
    %c0_i32_0 = arith.constant 0 : i32
    %c0_i32_1 = arith.constant 0 : i32
    return %arg0, %c0_i32, %c0_i32_0 : i32, i32, i32
  }
}

</mosaic_0001>

<bundles_post_ra>
// kernel: tpu_custom_call.1
= control target key start
LH: loop header
LB: loop body
LE: loop exit
PB: predicated region body
PF: predicated region fallthrough
CT: control target
= control target key end

     0   :  { %10 = vsyncpa [#allocation3], 0  ;;  %s6720_s0 = inlined_call_operand.vmem [shape: f32[2,18,18,16], index: 0, kind: input, shape index: {}]   ;;  %s6721_s1 = inlined_call_operand.vmem [shape: bf16[3,48,128], index: 1, kind: input, shape index: {}]   ;;  %s6722_s2 = inlined_call_operand.vmem [shape: bf16[3,96,128], index: 2, kind: input, shape index: {}]   ;;  %s6723_s3 = inlined_call_operand.vmem [shape: bf16[2,128,128], index: 3, kind: input, shape index: {}]   ;;  %s6724_s4 = inlined_call_operand.vmem [shape: f32[4,1,128], index: 4, kind: input, shape index: {}]   ;;  %s6725_s5 = inlined_call_operand.hbm [shape: f32[2,256,128], index: 5, kind: output, shape index: {}]  }
   0x1   :  { %12 = vsyncpa [#allocation3 + $0x1], 0  ;;  %s4737_s18 = smov 0   ;;  %s4739_s19 = smov 0  }
   0x2   :  { %s4741_s20 = smov 0   ;;  %s4743_s21 = smov 0  }
   0x3 LB: > { %s4758_s22 = sadd.s32 4294967295, %s4697_s21   ;;  %s3437_s23 = sadd.s32 4294967294, %s4697_s21   ;;  %s4697_s21 = sphi %s4743_s21, %s6895_s21   ;;  %s4693_s20 = sphi %s4741_s20, %s6894_s20   ;;  %s4689_s19 = sphi %s4739_s19, %s6893_s19   ;;  %s4685_s18 = sphi %s4737_s18, %s6892_s18  }
   0x4   : > { %s4762_s24 = sadd.s32 1, %s4697_s21   ;;  %s135_s25 = sadd.s32 1, %s4693_s20 }
   0x5   : > { %s132_s26 = ssub.s32 %s4697_s21, %s4762_s24  ;;  %p145_p0 = scmp.ne.s32.totalorder %s4693_s20, %s4689_s19 }
   0x6   : > { %p133_p1 = scmp.eq.s32.totalorder %s132_s26, 0  ;;  %p146_p2 = scmp.eq.s32.totalorder %s4758_s22, 1 }
   0x7   : > { %p151_p3 = scmp.ne.s32.totalorder %s4689_s19, %s4685_s18  ;;  %p152_p4 = scmp.eq.s32.totalorder %s3437_s23, 1 }
   0x8   : > { %s4773_s27 = scalar_select %p133_p1, %s4693_s20, %s135_s25  }
   0x9   : > { %p4775_p5 = por %p146_p2, %p145_p0  ;;  %p4779_p6 = por %p152_p4, %p151_p3 }
   0xa   : > { %p3440_p7 = scmp.ge.s32.totalorder %s4697_s21, 1  ;;  %p190_p8 = scmp.lt.s32.totalorder %s4697_s21, 3 }
   0xc   : > { %p191_p9 = pnand %p3440_p7, %p190_p8 }
   0xe   : > { %194 = sbr.rel (%p191_p9) target bundleno = 1600 (0x640), region = 40 }
  0x15   : > { %p218_p10 = scmp.lt.s32.totalorder %s4758_s22, 1  ;;  %v4588_v0 = vld [vmem:[%s6721_s1 + $0x18] sm:$0xff]   ;;  %v4589_v1 = vld [vmem:[%s6721_s1 + $0x20] sm:$0xff]   ;;  %v4590_v2 = vld [vmem:[%s6721_s1 + $0x28] sm:$0xff]   ;;  %vm531_vm0 = vcmask 1045504   ;;  %vm332_vm1 = vcmask 1046528  }
  0x16   : > { %3787 = vmatprep.subr.bf16.mxu0 %v4588_v0  ;;  %s4699_s16 = smov 32   ;;  %s4700_s17 = smov 16   ;;  %vm730_vm2 = vcmask 130048   ;;  %vm767_vm3 = vcmask 261120   ;;  %vm853_vm4 = vcmask 392192   ;;  %vm1608_vm5 = vcmask 1040384  }
  0x17   : > { %s219_s7 = scalar_select %p218_p10, %s4758_s22, 1  ;;  %3788 = vmatpush3.bf16.msra.mxu0 %v4588_v0  ;;  %vm2165_vm6 = vcmask 523264   ;;  %vm2277_vm7 = vcmask 785408   ;;  %vm4703_vm8 = vmmov 0  }
  0x18   : > { %3789 = vmatprep.subr.bf16.mxu0 %v4589_v1  ;;  %s215_s12 = sand.u32 1, %s4689_s19   ;;  %s4704_s30 = smov [#allocation2]  }
  0x19   : > { %s4201_s10 = smul.u32 432, %s219_s7  ;;  %s3441_s13 = sshll.u32 %s215_s12, 8 }
  0x1a   : > { %s6618_s14 = scalar_lea.vmem [#allocation2], %s3441_s13  ;;  %s6679_s25 = scalar_lea.sflag [#allocation3], %s215_s12 }
  0x1b   : > { %s4799_s15 = scalar_lea.vmem %s6720_s0, %s4201_s10  ;;  %3790 = vmatpush3.bf16.msra.mxu0 %v4589_v1  ;;  %s4639_s6 = sshll.u32 %s4704_s30, 4  ;;  %s4640_s6 = int_to_ptr.vmem [resolvable:$false] %s4639_s6 }
  0x1c   : > { %v4802_v3 = vld [vmem:[%s4799_s15 + $0x18] sm:$0xff]  ;;  %v4805_v4 = vld [vmem:[%s4799_s15 + $0x20] sm:$0xff]  ;;  %v229_v5 = vld [vmem:[%s4799_s15 + $0x28] sm:$0x3]  ;;  %3791 = vmatprep.subr.bf16.mxu0 %v4590_v2  ;;  %s4641_s7 = scalar_lea.vmem %s4640_s6, 8192 }
  0x1d   : > { %v537_v6 = vrot.slane %v4802_v3, 2  ;;  %v538_v7 = vrot.slane %v4805_v4, 2  ;;  %v540_v8 = vrot.slane %v229_v5, 2  ;;  %v338_v9 = vrot.slane %v4802_v3, 1  ;;  %v4812_v10 = vld [vmem:[%s4799_s15 + $0x30] sm:$0xff]  ;;  %v4815_v11 = vld [vmem:[%s4799_s15 + $0x38] sm:$0xff] }
  0x1e   : > { %v339_v12 = vrot.slane %v4805_v4, 1  ;;  %v341_v13 = vrot.slane %v229_v5, 1  ;;  %v232_v14 = vld [vmem:[%s4799_s15 + $0x40] sm:$0x3]  ;;  %v542_v15 = vrot.slane %v4812_v10, 2  ;;  %v543_v16 = vrot.slane %v4815_v11, 2 }
  0x1f   : > { %v539_v17 = vsel %vm531_vm0, %v537_v6, %v538_v7  ;;  %v541_v18 = vsel %vm531_vm0, %v538_v7, %v540_v8  ;;  %v545_v19 = vrot.slane %v232_v14, 2  ;;  %v343_v20 = vrot.slane %v4812_v10, 1  ;;  %v4825_v21 = vld [vmem:[%s4799_s15 + $0x60] sm:$0xff]  ;;  %v4828_v22 = vld [vmem:[%s4799_s15 + $0x68] sm:$0xff]  ;;  %v238_v23 = vld [vmem:[%s4799_s15 + $0x70] sm:$0x3]  ;;  %3792 = vmatpush3.bf16.msra.mxu0 %v4590_v2 }
  0x20   : > { %v4258_v24 = vpack.i.bf16 %v541_v18, %v539_v17  ;;  %v340_v25 = vsel %vm332_vm1, %v338_v9, %v339_v12  ;;  %v342_v26 = vsel %vm332_vm1, %v339_v12, %v341_v13  ;;  %v544_v27 = vsel %vm531_vm0, %v542_v15, %v543_v16  ;;  %v4835_v28 = vld [vmem:[%s4799_s15 + $0x48] sm:$0xff]  ;;  %v4838_v29 = vld [vmem:[%s4799_s15 + $0x50] sm:$0xff]  ;;  %v235_v34 = vld [vmem:[%s4799_s15 + $0x58] sm:$0x3] }
  0x21   : > { %v4248_v30 = vpack.i.bf16 %v342_v26, %v340_v25  ;;  %v546_v31 = vsel %vm531_vm0, %v543_v16, %v545_v19  ;;  %v344_v32 = vrot.slane %v4815_v11, 1  ;;  %v346_v33 = vrot.slane %v232_v14, 1  ;;  %v4854_v47 = vld [vmem:[%s4799_s15 + $0x90] sm:$0xff]  ;;  %v4860_v52 = vld [vmem:[%s4799_s15 + $0x98] sm:$0xff]  ;;  %v244_v53 = vld [vmem:[%s4799_s15 + $0xa0] sm:$0x3] }
  0x22   : > { %4259 = vrot.lane.b32.xlu1 %v4258_v24, %s4699_s16  ;;  %v4263_v35 = vpack.i.bf16 %v546_v31, %v544_v27  ;;  %v353_v36 = vrot.slane %v4825_v21, 1  ;;  %v354_v37 = vrot.slane %v4828_v22, 1  ;;  %v356_v38 = vrot.slane %v238_v23, 1  ;;  %v4868_v58 = vld [vmem:[%s4799_s15 + $0x78] sm:$0xff]  ;;  %v4871_v59 = vld [vmem:[%s4799_s15 + $0x80] sm:$0xff]  ;;  %v4901_v31 = vld [vmem:[%s4799_s15 + $0xa8] sm:$0xff] }
  0x23   : > { %4249 = vrot.lane.b32.xlu0 %v4248_v30, %s4700_s17  ;;  %v345_v39 = vsel %vm332_vm1, %v343_v20, %v344_v32  ;;  %v347_v40 = vsel %vm332_vm1, %v344_v32, %v346_v33  ;;  %v348_v41 = vrot.slane %v4835_v28, 1  ;;  %v349_v42 = vrot.slane %v4838_v29, 1  ;;  %v241_v0 = vld [vmem:[%s4799_s15 + $0x88] sm:$0x3]  ;;  %v4887_v16 = vld [vmem:[%s4799_s15 + $0xc0] sm:$0xff]  ;;  %v4904_v32 = vld [vmem:[%s4799_s15 + $0xb0] sm:$0xff] }
  0x24   : > { %v4253_v43 = vpack.i.bf16 %v347_v40, %v345_v39  ;;  %v355_v44 = vsel %vm332_vm1, %v353_v36, %v354_v37  ;;  %v357_v45 = vsel %vm332_vm1, %v354_v37, %v356_v38  ;;  %v351_v46 = vrot.slane %v235_v34, 1  ;;  %v250_v24 = vld [vmem:[%s4799_s15 + $0xd0] sm:$0x3]  ;;  %v247_v37 = vld [vmem:[%s4799_s15 + $0xb8] sm:$0x3]  ;;  %v4912_v38 = vld [vmem:[%s6721_s1] sm:$0xff]  }
  0x25   : > { %v4273_v48 = vpack.i.bf16 %v357_v45, %v355_v44  ;;  %v350_v49 = vsel %vm332_vm1, %v348_v41, %v349_v42  ;;  %v552_v50 = vrot.slane %v4825_v21, 2  ;;  %v553_v51 = vrot.slane %v4828_v22, 2  ;;  %3825 = vmatprep.subr.bf16.mxu0 %v4912_v38 }
  0x26   : > { %4264 = vrot.lane.b32.xlu1 %v4263_v35, %s4699_s16  ;;  %v352_v54 = vsel %vm332_vm1, %v349_v42, %v351_v46  ;;  %v555_v55 = vrot.slane %v238_v23, 2  ;;  %v547_v56 = vrot.slane %v4835_v28, 2  ;;  %v548_v57 = vrot.slane %v4838_v29, 2  ;;  %v4894_v23 = vld [vmem:[%s4799_s15 + $0xc8] sm:$0xff] }
  0x27   : > { %4254 = vrot.lane.b32.xlu0 %v4253_v43, %s4700_s17  ;;  %v4268_v60 = vpack.i.bf16 %v352_v54, %v350_v49  ;;  %v554_v61 = vsel %vm531_vm0, %v552_v50, %v553_v51  ;;  %v550_v62 = vrot.slane %v235_v34, 2  ;;  %v363_v63 = vrot.slane %v4854_v47, 1  ;;  %v4927_v50 = vld [vmem:[%s4799_s15 + $0xf8] sm:$0xff] }
  0x28   : > { %v556_v1 = vsel %vm531_vm0, %v553_v51, %v555_v55  ;;  %v549_v2 = vsel %vm531_vm0, %v547_v56, %v548_v57  ;;  %v364_v5 = vrot.slane %v4860_v52, 1  ;;  %v366_v6 = vrot.slane %v244_v53, 1  ;;  %v256_v56 = vld [vmem:[%s4799_s15 + $0x100] sm:$0x3] }
  0x29   : > { %v551_v7 = vsel %vm531_vm0, %v548_v57, %v550_v62  ;;  %v358_v8 = vrot.slane %v4868_v58, 1  ;;  %v359_v9 = vrot.slane %v4871_v59, 1  ;;  %v4283_v12 = vpack.i.bf16 %v556_v1, %v554_v61 }
  0x2a   : > { %4274 = vrot.lane.b32.xlu1 %v4273_v48, %s4700_s17  ;;  %v365_v13 = vsel %vm332_vm1, %v363_v63, %v364_v5  ;;  %v367_v14 = vsel %vm332_vm1, %v364_v5, %v366_v6  ;;  %v361_v15 = vrot.slane %v241_v0, 1  ;;  %v4278_v17 = vpack.i.bf16 %v551_v7, %v549_v2  ;;  %v4923_v48 = vld [vmem:[%s4799_s15 + $0xf0] sm:$0xff]  ;;  %v4937_v63 = vld [vmem:[%s4799_s15 + $0xd8] sm:$0xff]  ;;  %v253_v6 = vld [vmem:[%s4799_s15 + $0xe8] sm:$0x3] }
  0x2b   : > { %4269 = vrot.lane.b32.xlu0 %v4268_v60, %s4700_s17  ;;  %v360_v18 = vsel %vm332_vm1, %v358_v8, %v359_v9  ;;  %v562_v19 = vrot.slane %v4854_v47, 2  ;;  %v563_v20 = vrot.slane %v4860_v52, 2  ;;  %v565_v26 = vrot.slane %v244_v53, 2  ;;  %v4946_v8 = vld [vmem:[%s4799_s15 + $0xe0] sm:$0xff] }
  0x2c   : > { %v362_v25 = vsel %vm332_vm1, %v359_v9, %v361_v15  ;;  %v557_v27 = vrot.slane %v4868_v58, 2  ;;  %v558_v30 = vrot.slane %v4871_v59, 2  ;;  %v4293_v33 = vpack.i.bf16 %v367_v14, %v365_v13 }
  0x2d   : > { %v564_v34 = vsel %vm531_vm0, %v562_v19, %v563_v20  ;;  %v560_v35 = vrot.slane %v241_v0, 2  ;;  %v373_v36 = vrot.slane %v4887_v16, 1  ;;  %v566_v39 = vsel %vm531_vm0, %v563_v20, %v565_v26 }
  0x2e   : > { %4284 = vrot.lane.b32.xlu1 %v4283_v12, %s4699_s16  ;;  %v559_v40 = vsel %vm531_vm0, %v557_v27, %v558_v30  ;;  %v374_v41 = vrot.slane %v4894_v23, 1  ;;  %v376_v42 = vrot.slane %v250_v24, 1  ;;  %v4288_v43 = vpack.i.bf16 %v362_v25, %v360_v18 }
  0x2f   : > { %4279 = vrot.lane.b32.xlu0 %v4278_v17, %s4699_s16  ;;  %v561_v44 = vsel %vm531_vm0, %v558_v30, %v560_v35  ;;  %v368_v45 = vrot.slane %v4901_v31, 1  ;;  %v369_v46 = vrot.slane %v4904_v32, 1  ;;  %v371_v49 = vrot.slane %v247_v37, 1 }
  0x30   : > { %v4303_v51 = vpack.i.bf16 %v566_v39, %v564_v34  ;;  %v4298_v53 = vpack.i.bf16 %v561_v44, %v559_v40  ;;  %v375_v54 = vsel %vm332_vm1, %v373_v36, %v374_v41  ;;  %v377_v55 = vsel %vm332_vm1, %v374_v41, %v376_v42  ;;  %v4967_v39 = vld [vmem:[%s4799_s15 + $0x128] sm:$0xff]  ;;  %v262_v40 = vld [vmem:[%s4799_s15 + $0x130] sm:$0x3] }
  0x31   : > { %v572_v57 = vrot.slane %v4887_v16, 2  ;;  %v573_v60 = vrot.slane %v4894_v23, 2  ;;  %v575_v61 = vrot.slane %v250_v24, 2  ;;  %v567_v62 = vrot.slane %v4901_v31, 2 }
  0x32   : > { %4294 = vrot.lane.b32.xlu1 %v4293_v33, %s4700_s17  ;;  %v370_v0 = vsel %vm332_vm1, %v368_v45, %v369_v46  ;;  %v372_v1 = vsel %vm332_vm1, %v369_v46, %v371_v49  ;;  %v568_v2 = vrot.slane %v4904_v32, 2  ;;  %v570_v5 = vrot.slane %v247_v37, 2  ;;  %v4960_v33 = vld [vmem:[%s4799_s15 + $0x120] sm:$0xff]  ;;  %v4976_v45 = vld [vmem:[%s4799_s15 + $0x110] sm:$0xff] }
  0x33   : > { %4289 = vrot.lane.b32.xlu0 %v4288_v43, %s4700_s17  ;;  %v383_v7 = vrot.slane %v4923_v48, 1  ;;  %v384_v9 = vrot.slane %v4927_v50, 1  ;;  %v386_v12 = vrot.slane %v256_v56, 1  ;;  %v4313_v13 = vpack.i.bf16 %v377_v55, %v375_v54  ;;  %v4972_v43 = vld [vmem:[%s4799_s15 + $0x108] sm:$0xff] }
  0x34   : > { %v4308_v14 = vpack.i.bf16 %v372_v1, %v370_v0  ;;  %v574_v15 = vsel %vm531_vm0, %v572_v57, %v573_v60  ;;  %v576_v17 = vsel %vm531_vm0, %v573_v60, %v575_v61  ;;  %v569_v18 = vsel %vm531_vm0, %v567_v62, %v568_v2 }
  0x35   : > { %v571_v19 = vsel %vm531_vm0, %v568_v2, %v570_v5  ;;  %v378_v20 = vrot.slane %v4937_v63, 1  ;;  %v379_v24 = vrot.slane %v4946_v8, 1  ;;  %v381_v25 = vrot.slane %v253_v6, 1 }
  0x36   : > { %4304 = vrot.lane.b32.xlu1 %v4303_v51, %s4699_s16  ;;  %v582_v26 = vrot.slane %v4923_v48, 2  ;;  %v583_v27 = vrot.slane %v4927_v50, 2  ;;  %v585_v30 = vrot.slane %v256_v56, 2  ;;  %v385_v34 = vsel %vm332_vm1, %v383_v7, %v384_v9  ;;  %v4995_v7 = vld [vmem:[%s4799_s15 + $0x158] sm:$0xff] }
  0x37   : > { %4299 = vrot.lane.b32.xlu0 %v4298_v53, %s4699_s16  ;;  %v387_v35 = vsel %vm332_vm1, %v384_v9, %v386_v12  ;;  %v577_v36 = vrot.slane %v4937_v63, 2  ;;  %v578_v37 = vrot.slane %v4946_v8, 2  ;;  %v4323_v41 = vpack.i.bf16 %v576_v17, %v574_v15  ;;  %v259_v53 = vld [vmem:[%s4799_s15 + $0x118] sm:$0x3]  ;;  %v4998_v9 = vld [vmem:[%s4799_s15 + $0x160] sm:$0x3] }
  0x38   : > { %v580_v42 = vrot.slane %v253_v6, 2  ;;  %v4318_v44 = vpack.i.bf16 %v571_v19, %v569_v18  ;;  %v4333_v46 = vpack.i.bf16 %v387_v35, %v385_v34  ;;  %v380_v49 = vsel %vm332_vm1, %v378_v20, %v379_v24  ;;  %v4992_v6 = vld [vmem:[%s4799_s15 + $0x150] sm:$0xff]  ;;  %v5003_v17 = vld [vmem:[%s4799_s15 + $0x138] sm:$0xff] }
  0x39   : > { %v382_v51 = vsel %vm332_vm1, %v379_v24, %v381_v25  ;;  %v584_v54 = vsel %vm531_vm0, %v582_v26, %v583_v27  ;;  %v586_v55 = vsel %vm531_vm0, %v583_v27, %v585_v30  ;;  %v579_v56 = vsel %vm531_vm0, %v577_v36, %v578_v37  ;;  %v265_v25 = vld [vmem:[%s4799_s15 + $0x148] sm:$0x3] }
  0x3a   : > { %4314 = vrot.lane.b32.xlu1 %v4313_v13, %s4700_s17  ;;  %v393_v57 = vrot.slane %v4960_v33, 1  ;;  %v581_v60 = vsel %vm531_vm0, %v578_v37, %v580_v42  ;;  %v394_v61 = vrot.slane %v4967_v39, 1  ;;  %v396_v62 = vrot.slane %v262_v40, 1  ;;  %v5021_v42 = vld [vmem:[%s4799_s15 + $0x180] sm:$0xff] }
  0x3b   : > { %4309 = vrot.lane.b32.xlu0 %v4308_v14, %s4700_s17  ;;  %v388_v0 = vrot.slane %v4972_v43, 1  ;;  %v4328_v1 = vpack.i.bf16 %v382_v51, %v380_v49  ;;  %v389_v2 = vrot.slane %v4976_v45, 1  ;;  %v391_v5 = vrot.slane %v259_v53, 1 }
  0x3c   : > { %v4343_v12 = vpack.i.bf16 %v586_v55, %v584_v54  ;;  %v4338_v13 = vpack.i.bf16 %v581_v60, %v579_v56  ;;  %v592_v14 = vrot.slane %v4960_v33, 2  ;;  %v593_v15 = vrot.slane %v4967_v39, 2  ;;  %v5031_v54 = vld [vmem:[%s4799_s15 + $0x190] sm:$0x3]  ;;  %v5034_v55 = vld [vmem:[%s4799_s15 + $0x168] sm:$0xff] }
  0x3d   : > { %v395_v18 = vsel %vm332_vm1, %v393_v57, %v394_v61  ;;  %v397_v19 = vsel %vm332_vm1, %v394_v61, %v396_v62  ;;  %v595_v20 = vrot.slane %v262_v40, 2  ;;  %v587_v24 = vrot.slane %v4972_v43, 2  ;;  %v5018_v40 = vld [vmem:[%s4799_s15 + $0x140] sm:$0xff]  ;;  %6787 = vst [vmem:[#allocation5_spill] sm:$0xff] %v5034_v55  ;;  %v5041_v62 = vld [vmem:[%s4799_s15 + $0x170] sm:$0xff] }
  0x3e   : > { %4324 = vrot.lane.b32.xlu1 %v4323_v41, %s4699_s16  ;;  %v390_v26 = vsel %vm332_vm1, %v388_v0, %v389_v2  ;;  %v392_v27 = vsel %vm332_vm1, %v389_v2, %v391_v5  ;;  %v588_v30 = vrot.slane %v4976_v45, 2  ;;  %v590_v34 = vrot.slane %v259_v53, 2  ;;  %v271_v0 = vld [vmem:[%s4799_s15 + $0x178] sm:$0x3] }
  0x3f   : > { %4319 = vrot.lane.b32.xlu0 %v4318_v44, %s4699_s16  ;;  %v403_v35 = vrot.slane %v4992_v6, 1  ;;  %v404_v36 = vrot.slane %v4995_v7, 1  ;;  %v406_v37 = vrot.slane %v4998_v9, 1  ;;  %v4353_v41 = vpack.i.bf16 %v397_v19, %v395_v18  ;;  %v5024_v44 = vld [vmem:[%s4799_s15 + $0x188] sm:$0xff] }
  0x40   : > { %v594_v49 = vsel %vm531_vm0, %v592_v14, %v593_v15  ;;  %v596_v51 = vsel %vm531_vm0, %v593_v15, %v595_v20  ;;  %v398_v53 = vrot.slane %v5003_v17, 1  ;;  %v589_v56 = vsel %vm531_vm0, %v587_v24, %v588_v30 }
  0x41   : > { %v591_v57 = vsel %vm531_vm0, %v588_v30, %v590_v34  ;;  %v399_v60 = vrot.slane %v5018_v40, 1  ;;  %v401_v61 = vrot.slane %v265_v25, 1  ;;  %v407_v2 = vsel %vm332_vm1, %v404_v36, %v406_v37 }
  0x42   : > { %4334 = vrot.lane.b32.xlu1 %v4333_v46, %s4700_s17  ;;  %v4348_v46 = vpack.i.bf16 %v392_v27, %v390_v26  ;;  %v602_v5 = vrot.slane %v4992_v6, 2  ;;  %v4363_v14 = vpack.i.bf16 %v596_v51, %v594_v49  ;;  %v597_v15 = vrot.slane %v5003_v17, 2 }
  0x43   : > { %4329 = vrot.lane.b32.xlu0 %v4328_v1, %s4700_s17  ;;  %v405_v1 = vsel %vm332_vm1, %v403_v35, %v404_v36  ;;  %v598_v18 = vrot.slane %v5018_v40, 2  ;;  %v600_v19 = vrot.slane %v265_v25, 2  ;;  %v413_v20 = vrot.slane %v5021_v42, 1 }
  0x44   : > { %v414_v24 = vrot.slane %v5024_v44, 1  ;;  %v4358_v26 = vpack.i.bf16 %v591_v57, %v589_v56  ;;  %v4373_v27 = vpack.i.bf16 %v407_v2, %v405_v1  ;;  %v416_v30 = vrot.slane %v5031_v54, 1  ;;  %v5072_v2 = vld [vmem:[%s4799_s15] sm:$0xff] }
  0x45   : > { %v408_v34 = vrot.slane %v5034_v55, 1  ;;  %v402_v35 = vsel %vm332_vm1, %v399_v60, %v401_v61  ;;  %v409_v36 = vrot.slane %v5041_v62, 1  ;;  %v411_v25 = vrot.slane %v271_v0, 1 }
  0x46   : > { %4344 = vrot.lane.b32.xlu1 %v4343_v12, %s4699_s16  ;;  %v603_v12 = vrot.slane %v4995_v7, 2  ;;  %v612_v37 = vrot.slane %v5021_v42, 2  ;;  %v607_v49 = vrot.slane %v5034_v55, 2  ;;  %v608_v56 = vrot.slane %v5041_v62, 2  ;;  %v5075_v55 = vld [vmem:[%s4799_s15 + $0x8] sm:$0xff] }
  0x47   : > { %4339 = vrot.lane.b32.xlu0 %v4338_v13, %s4699_s16  ;;  %v605_v13 = vrot.slane %v4998_v9, 2  ;;  %v400_v9 = vsel %vm332_vm1, %v398_v53, %v399_v60  ;;  %v610_v57 = vrot.slane %v271_v0, 2  ;;  %v599_v61 = vsel %vm531_vm0, %v597_v15, %v598_v18  ;;  %v226_v15 = vld [vmem:[%s4799_s15 + $0x10] sm:$0x3] }
  0x48   : > { %v604_v51 = vsel %vm531_vm0, %v602_v5, %v603_v12  ;;  %v4368_v60 = vpack.i.bf16 %v402_v35, %v400_v9  ;;  %v601_v1 = vsel %vm531_vm0, %v598_v18, %v600_v19  ;;  %v415_v5 = vsel %vm332_vm1, %v413_v20, %v414_v24 }
  0x49   : > { %v606_v53 = vsel %vm531_vm0, %v603_v12, %v605_v13  ;;  %v417_v12 = vsel %vm332_vm1, %v414_v24, %v416_v30  ;;  %v410_v0 = vsel %vm332_vm1, %v408_v34, %v409_v36  ;;  %v4378_v13 = vpack.i.bf16 %v601_v1, %v599_v61 }
  0x4a   : > { %4354 = vrot.lane.b32.xlu1 %v4353_v41, %s4700_s17  ;;  %v613_v41 = vrot.slane %v5024_v44, 2  ;;  %v4393_v18 = vpack.i.bf16 %v417_v12, %v415_v5  ;;  %v333_v20 = vrot.slane %v5072_v2, 1  ;;  %v334_v24 = vrot.slane %v5075_v55, 1 }
  0x4b   : > { %4349 = vrot.lane.b32.xlu0 %v4348_v46, %s4700_s17  ;;  %v615_v46 = vrot.slane %v5031_v54, 2  ;;  %v4383_v54 = vpack.i.bf16 %v606_v53, %v604_v51  ;;  %v533_v30 = vrot.slane %v5075_v55, 2  ;;  %v609_v9 = vsel %vm531_vm0, %v607_v49, %v608_v56  ;;  %v5098_v51 = vld [vmem:[%s4799_s15 + $0x1a0] sm:$0xff]  ;;  %v277_v53 = vld [vmem:[%s4799_s15 + $0x1a8] sm:$0x3] }
  0x4c   : > { %v611_v35 = vsel %vm531_vm0, %v608_v56, %v610_v57  ;;  %v335_v1 = vsel %vm332_vm1, %v333_v20, %v334_v24  ;;  %v618_v49 = vrot.slane %v5098_v51, 2  ;;  %v620_v56 = vrot.slane %v277_v53, 2 }
  0x4d   : > { %v616_v34 = vsel %vm531_vm0, %v613_v41, %v615_v46  ;;  %v4398_v61 = vpack.i.bf16 %v611_v35, %v609_v9  ;;  %v419_v12 = vrot.slane %v5098_v51, 1 }
  0x4e   : > { %4364 = vrot.lane.b32.xlu1 %v4363_v14, %s4699_s16  ;;  %v412_v14 = vsel %vm332_vm1, %v409_v36, %v411_v25  ;;  %v535_v36 = vrot.slane %v226_v15, 2  ;;  %v336_v25 = vrot.slane %v226_v15, 1 }
  0x4f   : > { %4359 = vrot.lane.b32.xlu0 %v4358_v26, %s4699_s16  ;;  %v4388_v19 = vpack.i.bf16 %v412_v14, %v410_v0  ;;  %v614_v26 = vsel %vm531_vm0, %v612_v37, %v613_v41  ;;  %v5095_v37 = vld [vmem:[%s4799_s15 + $0x198] sm:$0xff]  ;;  %v421_v0 = vrot.slane %v277_v53, 1  ;;  %s4702_s15 = smov 64  }
  0x50   : > { %v536_v41 = vsel %vm531_vm0, %v533_v30, %v535_v36  ;;  %v617_v46 = vrot.slane %v5095_v37, 2  ;;  %v337_v57 = vsel %vm332_vm1, %v334_v24, %v336_v25  ;;  %v418_v5 = vrot.slane %v5095_v37, 1 }
  0x52   : > { %4374 = vrot.lane.b32.xlu1 %v4373_v27, %s4700_s17  ;;  %v532_v27 = vrot.slane %v5072_v2, 2  ;;  %v619_v15 = vsel %vm531_vm0, %v617_v46, %v618_v49 }
  0x53   : > { %4369 = vrot.lane.b32.xlu0 %v4368_v60, %s4700_s17  ;;  %v4403_v60 = vpack.i.bf16 %v616_v34, %v614_v26  ;;  %v422_v26 = vsel %vm332_vm1, %v419_v12, %v421_v0 }
  0x56   : > { %4384 = vrot.lane.b32.xlu1 %v4383_v54, %s4699_s16  ;;  %v534_v54 = vsel %vm531_vm0, %v532_v27, %v533_v30 }
  0x57   : > { %4379 = vrot.lane.b32.xlu0 %v4378_v13, %s4699_s16  ;;  %v4413_v14 = vpack.i.bf16 %v536_v41, %v534_v54  ;;  %v4408_v13 = vpack.i.bf16 %v337_v57, %v335_v1 }
  0x5a   : > { %4394 = vrot.lane.b32.xlu1 %v4393_v18, %s4700_s17  ;;  %v621_v18 = vsel %vm531_vm0, %v618_v49, %v620_v56 }
  0x5b   : > { %4389 = vrot.lane.b32.xlu0 %v4388_v19, %s4700_s17  ;;  %v420_v19 = vsel %vm332_vm1, %v418_v5, %v419_v12  ;;  %v4423_v20 = vpack.i.bf16 %v621_v18, %v619_v15 }
  0x5c   : > { %v4418_v24 = vpack.i.bf16 %v422_v26, %v420_v19 }
  0x5e   : > { %4404 = vrot.lane.b32.xlu1 %v4403_v60, %s4699_s16 }
  0x5f   : > { %4399 = vrot.lane.b32.xlu0 %v4398_v61, %s4699_s16 }
  0x62   : > { %4414 = vrot.lane.b32.xlu1 %v4413_v14, %s4699_s16 }
  0x63   : > { %4409 = vrot.lane.b32.xlu0 %v4408_v13, %s4700_s17 }
  0x66   : > { %4424 = vrot.lane.b32.xlu1 %v4423_v20, %s4699_s16 }
  0x67   : > { %4419 = vrot.lane.b32.xlu0 %v4418_v24, %s4700_s17 }
  0x94   : > { %v4260_v27 = vpop.permute.xlu1 %4259 }
  0x95   : > { %v4262_v30 = vunpack.i.h.bf16 %v4260_v27  ;;  %v4261_v34 = vunpack.i.l.bf16 %v4260_v27  ;;  %v4250_v9 = vpop.permute.xlu0 %4249 }
  0x96   : > { %v4252_v35 = vunpack.i.h.bf16 %v4250_v9  ;;  %v4251_v36 = vunpack.i.l.bf16 %v4250_v9 }
  0x98   : > { %v4265_v25 = vpop.permute.xlu1 %4264  ;;  %v733_v53 = vsel %vm730_vm2, %v4802_v3, %v4251_v36  ;;  %v734_v60 = vsel %vm730_vm2, %v4805_v4, %v4252_v35  ;;  %v4593_v36 = vld [vmem:[%s6721_s1 + $0x10] sm:$0xff]  }
  0x99   : > { %v4267_v61 = vunpack.i.h.bf16 %v4265_v25  ;;  %v4266_v1 = vunpack.i.l.bf16 %v4265_v25  ;;  %v4255_v54 = vpop.permute.xlu0 %4254  ;;  %v770_v41 = vsel %vm767_vm3, %v733_v53, %v4261_v34  ;;  %v771_v46 = vsel %vm767_vm3, %v734_v60, %v4262_v30 }
  0x9a   : > { %v4257_v49 = vunpack.i.h.bf16 %v4255_v54  ;;  %v4256_v56 = vunpack.i.l.bf16 %v4255_v54  ;;  %v5127_v57 = vpack.c.bf16 %v771_v46, %v770_v41 }
  0x9c   : > { %v736_v5 = vsel %vm730_vm2, %v4815_v11, %v4257_v49  ;;  %v735_v3 = vsel %vm730_vm2, %v4812_v10, %v4256_v56  ;;  %3793 = vmatprep.mubr.msk.bf16.mxu0 %vm853_vm4, %v5127_v57  ;;  %v4275_v4 = vpop.permute.xlu1 %4274  ;;  %v4592_v11 = vld [vmem:[%s6721_s1 + $0x8] sm:$0xff]  }
  0x9d   : > { %v4270_v12 = vpop.permute.xlu0 %4269  ;;  %v772_v0 = vsel %vm767_vm3, %v735_v3, %v4266_v1  ;;  %v773_v14 = vsel %vm767_vm3, %v736_v5, %v4267_v61  ;;  %v4277_v13 = vunpack.i.h.bf16 %v4275_v4  ;;  %v4276_v15 = vunpack.i.l.bf16 %v4275_v4 }
  0x9e   : > { %v5137_v18 = vpack.c.bf16 %v773_v14, %v772_v0  ;;  %v4272_v19 = vunpack.i.h.bf16 %v4270_v12  ;;  %v4271_v26 = vunpack.i.l.bf16 %v4270_v12 }
  0x9f   : > { %v740_v30 = vsel %vm730_vm2, %v4828_v22, %v4277_v13  ;;  %v739_v34 = vsel %vm730_vm2, %v4825_v21, %v4276_v15 }
  0xa0   : > { %3794 = vmatmul.mubr.msk.bf16.vlgmr.msra.gmra.mrb[0].mxu0 %vm853_vm4, %v5137_v18  ;;  %v4285_v10 = vpop.permute.xlu1 %4284  ;;  %v738_v25 = vsel %vm730_vm2, %v4838_v29, %v4272_v19 }
  0xa1   : > { %3826 = vmatpush3.bf16.msra.mxu0 %v4912_v38  ;;  %v4287_v20 = vunpack.i.h.bf16 %v4285_v10  ;;  %v4286_v24 = vunpack.i.l.bf16 %v4285_v10  ;;  %v4280_v27 = vpop.permute.xlu0 %4279  ;;  %v737_v38 = vsel %vm730_vm2, %v4835_v28, %v4271_v26  ;;  %v5167_v28 = vld [vmem:[%s6721_s1 + $0x30] sm:$0xff]  }
  0xa2   : > { %v4282_v9 = vunpack.i.h.bf16 %v4280_v27  ;;  %v4281_v35 = vunpack.i.l.bf16 %v4280_v27  ;;  %3827 = vmatprep.subr.bf16.mxu0 %v4592_v11 }
  0xa3   : > { %v776_v53 = vsel %vm767_vm3, %v739_v34, %v4286_v24  ;;  %v777_v22 = vsel %vm767_vm3, %v740_v30, %v4287_v20 }
  0xa4   : > { %v5158_v60 = vpack.c.bf16 %v777_v22, %v776_v53  ;;  %v774_v21 = vsel %vm767_vm3, %v737_v38, %v4281_v35  ;;  %v775_v61 = vsel %vm767_vm3, %v738_v25, %v4282_v9  ;;  %v4295_v1 = vpop.permute.xlu1 %4294 }
  0xa5   : > { %v5162_v54 = vpack.c.bf16 %v775_v61, %v774_v21  ;;  %v4290_v41 = vpop.permute.xlu0 %4289  ;;  %3828 = vmatpush3.bf16.msra.mxu0 %v4592_v11  ;;  %v4297_v46 = vunpack.i.h.bf16 %v4295_v1  ;;  %v4296_v29 = vunpack.i.l.bf16 %v4295_v1 }
  0xa6   : > { %3829 = vmatprep.subr.bf16.mxu0 %v4593_v36  ;;  %v4292_v49 = vunpack.i.h.bf16 %v4290_v41  ;;  %v4291_v56 = vunpack.i.l.bf16 %v4290_v41 }
  0xa7   : > { %3797 = vmatprep.mubr.msk.bf16.mxu0 %vm853_vm4, %v5162_v54  ;;  %v744_v0 = vsel %vm730_vm2, %v4860_v52, %v4297_v46  ;;  %v743_v14 = vsel %vm730_vm2, %v4854_v47, %v4296_v29 }
  0xa8   : > { %3798 = vmatmul.mubr.msk.bf16.gmra.mrb[4].mxu0 %vm853_vm4, %v5158_v60  ;;  %v4305_v5 = vpop.permute.xlu1 %4304  ;;  %v742_v11 = vsel %vm730_vm2, %v4871_v59, %v4292_v49  ;;  %v741_v19 = vsel %vm730_vm2, %v4868_v58, %v4291_v56 }
  0xa9   : > { %v4307_v3 = vunpack.i.h.bf16 %v4305_v5  ;;  %v4306_v4 = vunpack.i.l.bf16 %v4305_v5  ;;  %v4300_v12 = vpop.permute.xlu0 %4299  ;;  %3830 = vmatpush3.bf16.msra.mxu0 %v4593_v36 }
  0xaa   : > { %v4302_v13 = vunpack.i.h.bf16 %v4300_v12  ;;  %v4301_v15 = vunpack.i.l.bf16 %v4300_v12  ;;  %3863 = vmatprep.subr.bf16.mxu0 %v5167_v28 }
  0xab   : > { %v780_v26 = vsel %vm767_vm3, %v743_v14, %v4306_v4  ;;  %v781_v10 = vsel %vm767_vm3, %v744_v0, %v4307_v3 }
  0xac   : > { %v5184_v20 = vpack.c.bf16 %v781_v10, %v780_v26  ;;  %v778_v52 = vsel %vm767_vm3, %v741_v19, %v4301_v15  ;;  %v779_v47 = vsel %vm767_vm3, %v742_v11, %v4302_v13  ;;  %v4315_v24 = vpop.permute.xlu1 %4314 }
  0xad   : > { %v5188_v27 = vpack.c.bf16 %v779_v47, %v778_v52  ;;  %v4310_v30 = vpop.permute.xlu0 %4309  ;;  %v4317_v34 = vunpack.i.h.bf16 %v4315_v24  ;;  %v4316_v9 = vunpack.i.l.bf16 %v4315_v24 }
  0xae   : > { %v4312_v59 = vunpack.i.h.bf16 %v4310_v30  ;;  %v4311_v35 = vunpack.i.l.bf16 %v4310_v30 }
  0xaf   : > { %3801 = vmatprep.mubr.msk.bf16.mxu0 %vm853_vm4, %v5188_v27  ;;  %v748_v53 = vsel %vm730_vm2, %v4894_v23, %v4317_v34  ;;  %v747_v22 = vsel %vm730_vm2, %v4887_v16, %v4316_v9 }
  0xb0   : > { %3802 = vmatmul.mubr.msk.bf16.gmra.mrb[8].mxu0 %vm853_vm4, %v5184_v20  ;;  %v4325_v58 = vpop.permute.xlu1 %4324  ;;  %v746_v1 = vsel %vm730_vm2, %v4904_v32, %v4312_v59  ;;  %v745_v41 = vsel %vm730_vm2, %v4901_v31, %v4311_v35 }
  0xb1   : > { %v4327_v36 = vunpack.i.h.bf16 %v4325_v58  ;;  %v4326_v25 = vunpack.i.l.bf16 %v4325_v58  ;;  %v4320_v38 = vpop.permute.xlu0 %4319 }
  0xb2   : > { %v4322_v21 = vunpack.i.h.bf16 %v4320_v38  ;;  %v4321_v61 = vunpack.i.l.bf16 %v4320_v38 }
  0xb3   : > { %v784_v46 = vsel %vm767_vm3, %v747_v22, %v4326_v25  ;;  %v785_v29 = vsel %vm767_vm3, %v748_v53, %v4327_v36 }
  0xb4   : > { %v5204_v49 = vpack.c.bf16 %v785_v29, %v784_v46  ;;  %v782_v56 = vsel %vm767_vm3, %v745_v41, %v4321_v61  ;;  %v783_v23 = vsel %vm767_vm3, %v746_v1, %v4322_v21  ;;  %v4335_v5 = vpop.permute.xlu1 %4334 }
  0xb5   : > { %v5208_v16 = vpack.c.bf16 %v783_v23, %v782_v56  ;;  %v4330_v3 = vpop.permute.xlu0 %4329  ;;  %v4337_v4 = vunpack.i.h.bf16 %v4335_v5  ;;  %v4336_v12 = vunpack.i.l.bf16 %v4335_v5 }
  0xb6   : > { %v4332_v32 = vunpack.i.h.bf16 %v4330_v3  ;;  %v4331_v0 = vunpack.i.l.bf16 %v4330_v3 }
  0xb7   : > { %3805 = vmatprep.mubr.msk.bf16.mxu0 %vm853_vm4, %v5208_v16  ;;  %v752_v11 = vsel %vm730_vm2, %v4927_v50, %v4337_v4  ;;  %v751_v19 = vsel %vm730_vm2, %v4923_v48, %v4336_v12 }
  0xb8   : > { %3806 = vmatmul.mubr.msk.bf16.gmra.mrb[12].mxu0 %vm853_vm4, %v5204_v49  ;;  %v4345_v31 = vpop.permute.xlu1 %4344  ;;  %v750_v52 = vsel %vm730_vm2, %v4946_v8, %v4332_v32  ;;  %v749_v47 = vsel %vm730_vm2, %v4937_v63, %v4331_v0 }
  0xb9   : > { %v4347_v14 = vunpack.i.h.bf16 %v4345_v31  ;;  %v4346_v13 = vunpack.i.l.bf16 %v4345_v31  ;;  %v4340_v15 = vpop.permute.xlu0 %4339 }
  0xba   : > { %v4342_v26 = vunpack.i.h.bf16 %v4340_v15  ;;  %v4341_v10 = vunpack.i.l.bf16 %v4340_v15 }
  0xbb   : > { %v788_v24 = vsel %vm767_vm3, %v751_v19, %v4346_v13  ;;  %v789_v30 = vsel %vm767_vm3, %v752_v11, %v4347_v14 }
  0xbc   : > { %v5224_v34 = vpack.c.bf16 %v789_v30, %v788_v24  ;;  %v786_v9 = vsel %vm767_vm3, %v749_v47, %v4341_v10  ;;  %v787_v50 = vsel %vm767_vm3, %v750_v52, %v4342_v26  ;;  %v4355_v59 = vpop.permute.xlu1 %4354 }
  0xbd   : > { %v5228_v48 = vpack.c.bf16 %v787_v50, %v786_v9  ;;  %v4350_v35 = vpop.permute.xlu0 %4349  ;;  %v4357_v58 = vunpack.i.h.bf16 %v4355_v59  ;;  %v4356_v36 = vunpack.i.l.bf16 %v4355_v59 }
  0xbe   : > { %v4352_v8 = vunpack.i.h.bf16 %v4350_v35  ;;  %v4351_v25 = vunpack.i.l.bf16 %v4350_v35 }
  0xbf   : > { %3809 = vmatprep.mubr.msk.bf16.mxu0 %vm853_vm4, %v5228_v48  ;;  %v756_v21 = vsel %vm730_vm2, %v4967_v39, %v4357_v58  ;;  %v755_v61 = vsel %vm730_vm2, %v4960_v33, %v4356_v36 }
  0xc0   : > { %3810 = vmatmul.mubr.msk.bf16.gmra.mrb[16].mxu0 %vm853_vm4, %v5224_v34  ;;  %v4365_v63 = vpop.permute.xlu1 %4364  ;;  %v754_v46 = vsel %vm730_vm2, %v4976_v45, %v4352_v8  ;;  %v753_v29 = vsel %vm730_vm2, %v4972_v43, %v4351_v25 }
  0xc1   : > { %v4367_v38 = vunpack.i.h.bf16 %v4365_v63  ;;  %v4366_v53 = vunpack.i.l.bf16 %v4365_v63  ;;  %v4360_v22 = vpop.permute.xlu0 %4359 }
  0xc2   : > { %v4362_v1 = vunpack.i.h.bf16 %v4360_v22  ;;  %v4361_v41 = vunpack.i.l.bf16 %v4360_v22 }
  0xc3   : > { %v792_v56 = vsel %vm767_vm3, %v755_v61, %v4366_v53  ;;  %v793_v23 = vsel %vm767_vm3, %v756_v21, %v4367_v38 }
  0xc4   : > { %v5244_v5 = vpack.c.bf16 %v793_v23, %v792_v56  ;;  %v790_v3 = vsel %vm767_vm3, %v753_v29, %v4361_v41  ;;  %v791_v39 = vsel %vm767_vm3, %v754_v46, %v4362_v1  ;;  %v4375_v4 = vpop.permute.xlu1 %4374  ;;  %v6788_v41 = vld [vmem:[#allocation5_spill] sm:$0xff] }
  0xc5   : > { %v5248_v33 = vpack.c.bf16 %v791_v39, %v790_v3  ;;  %v4370_v12 = vpop.permute.xlu0 %4369  ;;  %v4377_v32 = vunpack.i.h.bf16 %v4375_v4  ;;  %v4376_v0 = vunpack.i.l.bf16 %v4375_v4 }
  0xc6   : > { %v4372_v45 = vunpack.i.h.bf16 %v4370_v12  ;;  %v4371_v31 = vunpack.i.l.bf16 %v4370_v12 }
  0xc7   : > { %3813 = vmatprep.mubr.msk.bf16.mxu0 %vm853_vm4, %v5248_v33  ;;  %v760_v11 = vsel %vm730_vm2, %v4995_v7, %v4377_v32  ;;  %v759_v19 = vsel %vm730_vm2, %v4992_v6, %v4376_v0 }
  0xc8   : > { %3814 = vmatmul.mubr.msk.bf16.gmra.mrb[20].mxu0 %vm853_vm4, %v5244_v5  ;;  %v4385_v43 = vpop.permute.xlu1 %4384  ;;  %v758_v52 = vsel %vm730_vm2, %v5018_v40, %v4372_v45  ;;  %v757_v47 = vsel %vm730_vm2, %v5003_v17, %v4371_v31 }
  0xc9   : > { %v4387_v14 = vunpack.i.h.bf16 %v4385_v43  ;;  %v4386_v13 = vunpack.i.l.bf16 %v4385_v43  ;;  %v4380_v15 = vpop.permute.xlu0 %4379 }
  0xca   : > { %v4382_v26 = vunpack.i.h.bf16 %v4380_v15  ;;  %v4381_v10 = vunpack.i.l.bf16 %v4380_v15  ;;  %v4595_v15 = vld [vmem:[%s6721_s1 + $0x38] sm:$0xff]  }
  0xcb   : > { %v796_v24 = vsel %vm767_vm3, %v759_v19, %v4386_v13  ;;  %v797_v30 = vsel %vm767_vm3, %v760_v11, %v4387_v14  ;;  %v5382_v11 = vld [vmem:[%s6724_s4] ss:$0 sm:$0xff] }
  0xcc   : > { %v5264_v9 = vpack.c.bf16 %v797_v30, %v796_v24  ;;  %v794_v50 = vsel %vm767_vm3, %v757_v47, %v4381_v10  ;;  %v795_v7 = vsel %vm767_vm3, %v758_v52, %v4382_v26  ;;  %v4395_v59 = vpop.permute.xlu1 %4394 }
  0xcd   : > { %v5268_v6 = vpack.c.bf16 %v795_v7, %v794_v50  ;;  %v4390_v35 = vpop.permute.xlu0 %4389  ;;  %v4397_v58 = vunpack.i.h.bf16 %v4395_v59  ;;  %v4396_v36 = vunpack.i.l.bf16 %v4395_v59 }
  0xce   : > { %v4392_v40 = vunpack.i.h.bf16 %v4390_v35  ;;  %v4391_v8 = vunpack.i.l.bf16 %v4390_v35 }
  0xcf   : > { %3817 = vmatprep.mubr.msk.bf16.mxu0 %vm853_vm4, %v5268_v6  ;;  %v764_v53 = vsel %vm730_vm2, %v5024_v44, %v4397_v58  ;;  %v763_v22 = vsel %vm730_vm2, %v5021_v42, %v4396_v36 }
  0xd0   : > { %3818 = vmatmul.mubr.msk.bf16.gmra.mrb[24].mxu0 %vm853_vm4, %v5264_v9  ;;  %v4405_v17 = vpop.permute.xlu1 %4404  ;;  %v762_v1 = vsel %vm730_vm2, %v5041_v62, %v4392_v40  ;;  %v761_v46 = vsel %vm730_vm2, %v6788_v41, %v4391_v8 }
  0xd1   : > { %v4407_v25 = vunpack.i.h.bf16 %v4405_v17  ;;  %v4406_v63 = vunpack.i.l.bf16 %v4405_v17  ;;  %v4400_v38 = vpop.permute.xlu0 %4399 }
  0xd2   : > { %v4402_v21 = vunpack.i.h.bf16 %v4400_v38  ;;  %v4401_v61 = vunpack.i.l.bf16 %v4400_v38 }
  0xd3   : > { %v800_v29 = vsel %vm767_vm3, %v763_v22, %v4406_v63  ;;  %v801_v56 = vsel %vm767_vm3, %v764_v53, %v4407_v25 }
  0xd4   : > { %v820_v23 = vpack.c.bf16 %v801_v56, %v800_v29  ;;  %v798_v3 = vsel %vm767_vm3, %v761_v46, %v4401_v61  ;;  %v799_v44 = vsel %vm767_vm3, %v762_v1, %v4402_v21  ;;  %v4415_v39 = vpop.permute.xlu1 %4414  ;;  %v4601_v21 = vld [vmem:[%s6722_s2 + $0x50] sm:$0xff]  }
  0xd5   : > { %v819_v4 = vpack.c.bf16 %v799_v44, %v798_v3  ;;  %v4410_v42 = vpop.permute.xlu0 %4409  ;;  %v4417_v12 = vunpack.i.h.bf16 %v4415_v39  ;;  %v4416_v32 = vunpack.i.l.bf16 %v4415_v39 }
  0xd6   : > { %v4412_v0 = vunpack.i.h.bf16 %v4410_v42  ;;  %v4411_v45 = vunpack.i.l.bf16 %v4410_v42 }
  0xd7   : > { %3821 = vmatprep.mubr.msk.bf16.mxu0 %vm853_vm4, %v819_v4 }
  0xd8   : > { %3822 = vmatmul.mubr.msk.bf16.gmra.mrb[28].mxu0 %vm853_vm4, %v820_v23  ;;  %v732_v62 = vsel %vm730_vm2, %v5075_v55, %v4412_v0  ;;  %v731_v31 = vsel %vm730_vm2, %v5072_v2, %v4411_v45  ;;  %v4596_v55 = vld [vmem:[%s6721_s1 + $0x40] sm:$0xff]  }
  0xd9   : > { %v768_v43 = vsel %vm767_vm3, %v731_v31, %v4416_v32  ;;  %v769_v14 = vsel %vm767_vm3, %v732_v62, %v4417_v12  ;;  %v4420_v2 = vpop.permute.xlu0 %4419 }
  0xda   : > { %v804_v13 = vpack.c.bf16 %v769_v14, %v768_v43 }
  0xdc   : > { %3831 = vmatprep.mubr.msk.bf16.mxu0 %vm853_vm4, %v804_v13 }
  0xe0   : > { %3832 = vmatmul.mubr.msk.bf16.vlgmr.msra.gmra.mrb[0].mxu0 %vm853_vm4, %v5127_v57  ;;  %v4422_v57 = vunpack.i.h.bf16 %v4420_v2 }
  0xe1   : > { %3864 = vmatpush3.bf16.msra.mxu0 %v5167_v28  ;;  %3835 = vmatprep.mubr.msk.bf16.mxu0 %vm853_vm4, %v5137_v18 }
  0xe2   : > { %3865 = vmatprep.subr.bf16.mxu0 %v4595_v15 }
  0xe5   : > { %3866 = vmatpush3.bf16.msra.mxu0 %v4595_v15 }
  0xe6   : > { %3867 = vmatprep.subr.bf16.mxu0 %v4596_v55 }
  0xe8   : > { %3836 = vmatmul.mubr.msk.bf16.gmra.mrb[4].mxu0 %vm853_vm4, %v5162_v54 }
  0xe9   : > { %3839 = vmatprep.mubr.msk.bf16.mxu0 %vm853_vm4, %v5158_v60  ;;  %3868 = vmatpush3.bf16.msra.mxu0 %v4596_v55 }
  0xf0   : > { %3840 = vmatmul.mubr.msk.bf16.gmra.mrb[8].mxu0 %vm853_vm4, %v5188_v27 }
  0xf1   : > { %3843 = vmatprep.mubr.msk.bf16.mxu0 %vm853_vm4, %v5184_v20 }
  0xf8   : > { %3844 = vmatmul.mubr.msk.bf16.gmra.mrb[12].mxu0 %vm853_vm4, %v5208_v16 }
  0xf9   : > { %3847 = vmatprep.mubr.msk.bf16.mxu0 %vm853_vm4, %v5204_v49 }
 0x100   : > { %3848 = vmatmul.mubr.msk.bf16.gmra.mrb[16].mxu0 %vm853_vm4, %v5228_v48 }
 0x101   : > { %3851 = vmatprep.mubr.msk.bf16.mxu0 %vm853_vm4, %v5224_v34 }
 0x108   : > { %3852 = vmatmul.mubr.msk.bf16.gmra.mrb[20].mxu0 %vm853_vm4, %v5248_v33 }
 0x109   : > { %3855 = vmatprep.mubr.msk.bf16.mxu0 %vm853_vm4, %v5244_v5 }
 0x110   : > { %3856 = vmatmul.mubr.msk.bf16.gmra.mrb[24].mxu0 %vm853_vm4, %v5268_v6 }
 0x111   : > { %3859 = vmatprep.mubr.msk.bf16.mxu0 %vm853_vm4, %v5264_v9 }
 0x118   : > { %3860 = vmatmul.mubr.msk.bf16.gmra.mrb[28].mxu0 %vm853_vm4, %v819_v4 }
 0x119   : > { %3869 = vmatprep.mubr.msk.bf16.mxu0 %vm853_vm4, %v5137_v18  ;;  %v4421_v18 = vunpack.i.l.bf16 %v4420_v2 }
 0x120   : > { %3870 = vmatmul.mubr.msk.bf16.vlgmr.msra.gmra.mrb[0].mxu0 %vm853_vm4, %v5162_v54 }
 0x121   : > { %3873 = vmatprep.mubr.msk.bf16.mxu0 %vm853_vm4, %v5158_v60  ;;  %v4425_v60 = vpop.permute.xlu1 %4424 }
 0x122   : > { %v4427_v54 = vunpack.i.h.bf16 %v4425_v60  ;;  %v4426_v28 = vunpack.i.l.bf16 %v4425_v60 }
 0x128   : > { %3874 = vmatmul.mubr.msk.bf16.gmra.mrb[4].mxu0 %vm853_vm4, %v5188_v27  ;;  %v765_v27 = vsel %vm730_vm2, %v5095_v37, %v4421_v18  ;;  %v4598_v37 = vld [vmem:[%s6722_s2 + $0x38] sm:$0xff]  }
 0x129   : > { %3877 = vmatprep.mubr.msk.bf16.mxu0 %vm853_vm4, %v5184_v20  ;;  %v766_v20 = vsel %vm730_vm2, %v5098_v51, %v4422_v57  ;;  %v4597_v51 = vld [vmem:[%s6722_s2 + $0x30] sm:$0xff]  }
 0x12a   : > { %3901 = vmatprep.subr.bf16.mxu1 %v4597_v51 }
 0x12b   : > { %3902 = vmatpush3.bf16.msra.mxu1 %v4597_v51 }
 0x12c   : > { %3903 = vmatprep.subr.bf16.mxu1 %v4598_v37 }
 0x12f   : > { %3904 = vmatpush3.bf16.msra.mxu1 %v4598_v37 }
 0x130   : > { %3878 = vmatmul.mubr.msk.bf16.gmra.mrb[8].mxu0 %vm853_vm4, %v5208_v16  ;;  %v803_v16 = vsel %vm767_vm3, %v766_v20, %v4427_v54 }
 0x131   : > { %3881 = vmatprep.mubr.msk.bf16.mxu0 %vm853_vm4, %v5204_v49  ;;  %v802_v49 = vsel %vm767_vm3, %v765_v27, %v4426_v28  ;;  %v4602_v27 = vld [vmem:[%s6722_s2 + $0x58] sm:$0xff]  }
 0x138   : > { %3882 = vmatmul.mubr.msk.bf16.gmra.mrb[12].mxu0 %vm853_vm4, %v5228_v48  ;;  %v6727_v48 = vmov 0.0  }
 0x139   : > { %3885 = vmatprep.mubr.msk.bf16.mxu0 %vm853_vm4, %v5224_v34  ;;  %v821_v34 = vpack.c.bf16 %v803_v16, %v802_v49  ;;  %4033 = vmatprep.subr.bf16.mxu0 %v6727_v48 }
 0x140   : > { %3886 = vmatmul.mubr.msk.bf16.gmra.mrb[16].mxu0 %vm853_vm4, %v5248_v33  ;;  %v4600_v33 = vld [vmem:[%s6722_s2 + $0x48] sm:$0xff]  }
 0x141   : > { %3889 = vmatprep.mubr.msk.bf16.mxu0 %vm853_vm4, %v5244_v5  ;;  %v4599_v5 = vld [vmem:[%s6722_s2 + $0x40] sm:$0xff]  }
 0x142   : > { %3905 = vmatprep.subr.bf16.mxu1 %v4599_v5 }
 0x143   : > { %3906 = vmatpush3.bf16.msra.mxu1 %v4599_v5 }
 0x144   : > { %3907 = vmatprep.subr.bf16.mxu1 %v4600_v33 }
 0x147   : > { %3908 = vmatpush3.bf16.msra.mxu1 %v4600_v33 }
 0x148   : > { %3890 = vmatmul.mubr.msk.bf16.gmra.mrb[20].mxu0 %vm853_vm4, %v5268_v6  ;;  %3909 = vmatprep.subr.bf16.mxu1 %v4601_v21 }
 0x149   : > { %3893 = vmatprep.mubr.msk.bf16.mxu0 %vm853_vm4, %v5264_v9 }
 0x14b   : > { %3910 = vmatpush3.bf16.msra.mxu1 %v4601_v21 }
 0x14c   : > { %3911 = vmatprep.subr.bf16.mxu1 %v4602_v27 }
 0x14f   : > { %3912 = vmatpush3.bf16.msra.mxu1 %v4602_v27 }
 0x150   : > { %3894 = vmatmul.mubr.msk.bf16.gmra.mrb[24].mxu0 %vm853_vm4, %v819_v4 }
 0x151   : > { %3897 = vmatprep.mubr.msk.bf16.mxu0 %vm853_vm4, %v820_v23 }
 0x158   : > { %3898 = vmatmul.mubr.msk.bf16.gmra.mrb[28].mxu0 %vm853_vm4, %v821_v34 }
 0x1f3   : > { %v3871_v19 = vpop.f32.mrb[0].mxu0 }
 0x1f4   : > { %v5385_v26 = vadd.f32 %v3871_v19, %v5382_v11  ;;  %v1307_v10 = vpop.f32.mrb[1].mxu0 }
 0x1f5   : > { %v5388_v52 = vadd.f32 %v5382_v11, %v1307_v10  ;;  %v3872_v47 = vpop.f32.mrb[2].mxu0 }
 0x1f6   : > { %v1546_v24 = vmax.f32 %v5385_v26, 0.0  ;;  %v5392_v30 = vadd.f32 %v3872_v47, %v5382_v11  ;;  %v1310_v9 = vpop.f32.mrb[3].mxu0 }
 0x1f7   : > { %v1544_v50 = vmax.f32 %v5388_v52, 0.0  ;;  %v5396_v7 = vadd.f32 %v5382_v11, %v1310_v9 }
 0x1f8   : > { %v1547_v59 = vmax.f32 %v5392_v30, 0.0  ;;  %v1612_v6 = vrot.slane %v1546_v24, 7 }
 0x1f9   : > { %v1545_v35 = vmax.f32 %v5396_v7, 0.0  ;;  %v1609_v36 = vrot.slane %v1544_v50, 7 }
 0x1fa   : > { %v1613_v58 = vrot.slane %v1547_v59, 7  ;;  %v5407_v38 = vsel %vm1608_vm5, 0.0, %v1612_v6 }
 0x1fb   : > { %v1610_v40 = vrot.slane %v1545_v35, 7  ;;  %v3875_v8 = vpop.f32.mrb[4].mxu0  ;;  %v1777_v44 = vrot.slane %v5407_v38, 1  ;;  %v5434_v39 = vsel %vm1608_vm5, 0.0, %v1609_v36  ;;  %v1958_v37 = vrot.slane %v5407_v38, 2 }
 0x1fc   : > { %v5401_v17 = vsel %vm1608_vm5, %v1612_v6, %v1613_v58  ;;  %v5404_v25 = vsel %vm1608_vm5, %v1613_v58, 0.0  ;;  %v1323_v63 = vpop.f32.mrb[5].mxu0  ;;  %v5420_v41 = vadd.f32 %v3875_v8, %v5382_v11  ;;  %v1772_v43 = vrot.slane %v5434_v39, 1 }
 0x1fd   : > { %v5410_v53 = vsel %vm1608_vm5, %v1609_v36, %v1610_v40  ;;  %v3876_v22 = vpop.f32.mrb[6].mxu0  ;;  %v1780_v61 = vrot.slane %v5404_v25, 1  ;;  %v5417_v1 = vsel %vm1608_vm5, %v1610_v40, 0.0  ;;  %v5423_v46 = vadd.f32 %v5382_v11, %v1323_v63  ;;  %v5490_v63 = vld [vmem:[%s6722_s2] sm:$0xff]  }
 0x1fe   : > { %6789 = vst [vmem:[#allocation5_spill] sm:$0xff] %v5420_v41  ;;  %v1326_v29 = vpop.f32.mrb[7].mxu0  ;;  %v5426_v56 = vadd.f32 %v3876_v22, %v5382_v11  ;;  %v1778_v3 = vrot.slane %v5401_v17, 1  ;;  %v1550_v4 = vmax.f32 %v5420_v41, 0.0  ;;  %v1775_v12 = vrot.slane %v5417_v1, 1  ;;  %3945 = vmatprep.subr.bf16.mxu1 %v5490_v63 }
 0x1ff   : > { %6790 = vst [vmem:[#allocation6_spill] sm:$0xff] %v5423_v46  ;;  %v5429_v23 = vadd.f32 %v5382_v11, %v1326_v29  ;;  %v1548_v42 = vmax.f32 %v5423_v46, 0.0  ;;  %v1773_v45 = vrot.slane %v5410_v53, 1  ;;  %v1961_v51 = vrot.slane %v5404_v25, 2 }
 0x200   : > { %6791 = vst [vmem:[#allocation7_spill] sm:$0xff] %v5426_v56  ;;  %v1551_v32 = vmax.f32 %v5426_v56, 0.0  ;;  %v1779_v62 = vsel %vm332_vm1, %v1777_v44, %v1778_v3  ;;  %v1781_v31 = vsel %vm332_vm1, %v1778_v3, %v1780_v61  ;;  %v1618_v2 = vrot.slane %v1550_v4, 7 }
 0x201   : > { %6792 = vst [vmem:[#allocation8_spill] sm:$0xff] %v5429_v23  ;;  %v1549_v0 = vmax.f32 %v5429_v23, 0.0  ;;  %v4428_v15 = vpack.i.bf16 %v1781_v31, %v1779_v62  ;;  %v1615_v57 = vrot.slane %v1548_v42, 7  ;;  %v1774_v60 = vsel %vm332_vm1, %v1772_v43, %v1773_v45 }
 0x202   : > { %v1619_v14 = vrot.slane %v1551_v32, 7  ;;  %v1776_v54 = vsel %vm332_vm1, %v1773_v45, %v1775_v12  ;;  %v5463_v5 = vsel %vm1608_vm5, 0.0, %v1618_v2  ;;  %v1959_v24 = vrot.slane %v5401_v17, 2 }
 0x203   : > { %v1616_v13 = vrot.slane %v1549_v0, 7  ;;  %v3879_v55 = vpop.f32.mrb[8].mxu0  ;;  %4429 = vrot.lane.b32.xlu1 %v4428_v15, %s4699_s16  ;;  %v4438_v33 = vpack.i.bf16 %v1776_v54, %v1774_v60  ;;  %v1953_v50 = vrot.slane %v5434_v39, 2  ;;  %v1956_v59 = vrot.slane %v5417_v1, 2 }
 0x204   : > { %v1339_v18 = vpop.f32.mrb[9].mxu0  ;;  %v5449_v28 = vadd.f32 %v3879_v55, %v5382_v11  ;;  %v5455_v49 = vsel %vm1608_vm5, %v1618_v2, %v1619_v14  ;;  %v5479_v6 = vsel %vm1608_vm5, %v1619_v14, 0.0  ;;  %v1954_v35 = vrot.slane %v5410_v53, 2 }
 0x205   : > { %v3880_v20 = vpop.f32.mrb[10].mxu0  ;;  %v5458_v16 = vsel %vm1608_vm5, %v1615_v57, %v1616_v13  ;;  %v5466_v19 = vadd.f32 %v5382_v11, %v1339_v18  ;;  %4439 = vrot.lane.b32.xlu0 %v4438_v33, %s4699_s16  ;;  %v1960_v36 = vsel %vm531_vm0, %v1958_v37, %v1959_v24  ;;  %v1962_v40 = vsel %vm531_vm0, %v1959_v24, %v1961_v51 }
 0x206   : > { %6793 = vst [vmem:[#allocation9_spill] sm:$0xff] %v5449_v28  ;;  %v1342_v34 = vpop.f32.mrb[11].mxu0  ;;  %v1554_v10 = vmax.f32 %v5449_v28, 0.0  ;;  %v5470_v47 = vadd.f32 %v3880_v20, %v5382_v11  ;;  %v1788_v8 = vrot.slane %v5455_v49, 1  ;;  %v1787_v22 = vrot.slane %v5463_v5, 1 }
 0x207   : > { %6794 = vst [vmem:[#allocation10_spill] sm:$0xff] %v5466_v19  ;;  %v5474_v9 = vadd.f32 %v5382_v11, %v1342_v34  ;;  %v5494_v21 = vsel %vm1608_vm5, %v1616_v13, 0.0  ;;  %v1552_v61 = vmax.f32 %v5466_v19, 0.0  ;;  %v4433_v1 = vpack.i.bf16 %v1962_v40, %v1960_v36 }
 0x208   : > { %6795 = vst [vmem:[#allocation11_spill] sm:$0xff] %v5470_v47  ;;  %v1555_v58 = vmax.f32 %v5470_v47, 0.0  ;;  %v1790_v3 = vrot.slane %v5479_v6, 1  ;;  %v1624_v44 = vrot.slane %v1554_v10, 7  ;;  %v5501_v32 = vsel %vm1608_vm5, 0.0, %v1615_v57 }
 0x209   : > { %6796 = vst [vmem:[#allocation12_spill] sm:$0xff] %v5474_v9  ;;  %v1553_v42 = vmax.f32 %v5474_v9, 0.0  ;;  %4434 = vrot.lane.b32.xlu1 %v4433_v1, %s4702_s15  ;;  %v1955_v0 = vsel %vm531_vm0, %v1953_v50, %v1954_v35  ;;  %v1957_v45 = vsel %vm531_vm0, %v1954_v35, %v1956_v59  ;;  %v1785_v31 = vrot.slane %v5494_v21, 1 }
 0x20a   : > { %v1625_v4 = vrot.slane %v1555_v58, 7  ;;  %v1789_v14 = vsel %vm332_vm1, %v1787_v22, %v1788_v8  ;;  %v1621_v13 = vrot.slane %v1552_v61, 7  ;;  %v4443_v55 = vpack.i.bf16 %v1957_v45, %v1955_v0 }
 0x20b   : > { %v3883_v25 = vpop.f32.mrb[12].mxu0  ;;  %v1622_v15 = vrot.slane %v1553_v42, 7  ;;  %v1782_v2 = vrot.slane %v5501_v32, 1  ;;  %v1791_v57 = vsel %vm332_vm1, %v1788_v8, %v1790_v3  ;;  %v1783_v18 = vrot.slane %v5458_v16, 1 }
 0x20c   : > { %v1355_v29 = vpop.f32.mrb[13].mxu0  ;;  %v5508_v43 = vsel %vm1608_vm5, %v1624_v44, %v1625_v4  ;;  %v5515_v60 = vadd.f32 %v3883_v25, %v5382_v11  ;;  %4444 = vrot.lane.b32.xlu0 %v4443_v55, %s4702_s15  ;;  %v4448_v20 = vpack.i.bf16 %v1791_v57, %v1789_v14  ;;  %v1971_v51 = vrot.slane %v5479_v6, 2 }
 0x20d   : > { %v3884_v12 = vpop.f32.mrb[14].mxu0  ;;  %v5518_v54 = vsel %vm1608_vm5, %v1621_v13, %v1622_v15  ;;  %v5522_v27 = vadd.f32 %v5382_v11, %v1355_v29  ;;  %v1784_v37 = vsel %vm332_vm1, %v1782_v2, %v1783_v18  ;;  %v1786_v33 = vsel %vm332_vm1, %v1783_v18, %v1785_v31 }
 0x20e   : > { %v1358_v62 = vpop.f32.mrb[15].mxu0  ;;  %6797 = vst [vmem:[#allocation13_spill] sm:$0xff] %v5515_v60  ;;  %v5525_v34 = vadd.f32 %v3884_v12, %v5382_v11  ;;  %v1968_v24 = vrot.slane %v5463_v5, 2  ;;  %4449 = vrot.lane.b32.xlu1 %v4448_v20, %s4699_s16  ;;  %v4458_v50 = vpack.i.bf16 %v1786_v33, %v1784_v37  ;;  %v1558_v59 = vmax.f32 %v5515_v60, 0.0 }
 0x20f   : > { %6798 = vst [vmem:[#allocation14_spill] sm:$0xff] %v5522_v27  ;;  %v1966_v58 = vrot.slane %v5494_v21, 2  ;;  %v5535_v36 = vsel %vm1608_vm5, 0.0, %v1624_v44  ;;  %v1969_v40 = vrot.slane %v5455_v49, 2  ;;  %v1726_v25 = vsel %vm1608_vm5, %v1625_v4, 0.0 }
 0x210   : > { %6799 = vst [vmem:[#allocation15_spill] sm:$0xff] %v5525_v34  ;;  %v1559_v6 = vmax.f32 %v5525_v34, 0.0  ;;  %4459 = vrot.lane.b32.xlu0 %v4458_v50, %s4699_s16  ;;  %v1630_v22 = vrot.slane %v1558_v59, 7  ;;  %v1556_v61 = vmax.f32 %v5522_v27, 0.0  ;;  %v5543_v1 = vadd.f32 %v5382_v11, %v1358_v62 }
 0x211   : > { %v1970_v3 = vsel %vm531_vm0, %v1968_v24, %v1969_v40  ;;  %v1972_v44 = vsel %vm531_vm0, %v1969_v40, %v1971_v51  ;;  %v1964_v42 = vrot.slane %v5458_v16, 2  ;;  %v5549_v12 = vsel %vm1608_vm5, %v1622_v15, 0.0 }
 0x212   : > { %6800 = vst [vmem:[#allocation16_spill] sm:$0xff] %v5543_v1  ;;  %v1631_v21 = vrot.slane %v1559_v6, 7  ;;  %v4453_v4 = vpack.i.bf16 %v1972_v44, %v1970_v3  ;;  %v1557_v0 = vmax.f32 %v5543_v1, 0.0  ;;  %v1798_v45 = vrot.slane %v5508_v43, 1 }
 0x213   : > { %v3887_v10 = vpop.f32.mrb[16].mxu0  ;;  %v1963_v31 = vrot.slane %v5501_v32, 2  ;;  %v1800_v62 = vrot.slane %v1726_v25, 1  ;;  %v1797_v55 = vrot.slane %v5535_v36, 1  ;;  %v5559_v2 = vsel %vm1608_vm5, 0.0, %v1621_v13 }
 0x214   : > { %v1371_v35 = vpop.f32.mrb[17].mxu0  ;;  %v5555_v14 = vsel %vm1608_vm5, %v1630_v22, %v1631_v21  ;;  %v1627_v57 = vrot.slane %v1556_v61, 7  ;;  %4454 = vrot.lane.b32.xlu1 %v4453_v4, %s4702_s15  ;;  %v1628_v15 = vrot.slane %v1557_v0, 7  ;;  %v1795_v18 = vrot.slane %v5549_v12, 1 }
 0x215   : > { %v3888_v8 = vpop.f32.mrb[18].mxu0  ;;  %v1965_v20 = vsel %vm531_vm0, %v1963_v31, %v1964_v42  ;;  %v1967_v51 = vsel %vm531_vm0, %v1964_v42, %v1966_v58  ;;  %v1978_v33 = vrot.slane %v5535_v36, 2  ;;  %v1799_v13 = vsel %vm332_vm1, %v1797_v55, %v1798_v45 }
 0x216   : > { %v1374_v29 = vpop.f32.mrb[19].mxu0  ;;  %v5569_v24 = vsel %vm1608_vm5, %v1627_v57, %v1628_v15  ;;  %v4463_v50 = vpack.i.bf16 %v1967_v51, %v1965_v20  ;;  %v1792_v6 = vrot.slane %v5559_v2, 1  ;;  %v1981_v40 = vrot.slane %v1726_v25, 2 }
 0x217   : > { %v1801_v61 = vsel %vm332_vm1, %v1798_v45, %v1800_v62  ;;  %v1793_v3 = vrot.slane %v5518_v54, 1  ;;  %v5579_v42 = vadd.f32 %v3887_v10, %v5382_v11  ;;  %v5582_v4 = vadd.f32 %v5382_v11, %v1371_v35 }
 0x218   : > { %4464 = vrot.lane.b32.xlu0 %v4463_v50, %s4702_s15  ;;  %v4468_v44 = vpack.i.bf16 %v1801_v61, %v1799_v13  ;;  %v5585_v0 = vadd.f32 %v3888_v8, %v5382_v11  ;;  %v1979_v62 = vrot.slane %v5508_v43, 2  ;;  %v5591_v55 = vadd.f32 %v5382_v11, %v1374_v29 }
 0x219   : > { %6801 = vst [vmem:[#allocation17_spill] sm:$0xff] %v5579_v42  ;;  %6802 = vst [vmem:[#allocation18_spill] sm:$0xff] %v5582_v4  ;;  %v1794_v25 = vsel %vm332_vm1, %v1792_v6, %v1793_v3  ;;  %v1796_v45 = vsel %vm332_vm1, %v1793_v3, %v1795_v18  ;;  %v1973_v20 = vrot.slane %v5559_v2, 2  ;;  %v1976_v10 = vrot.slane %v5549_v12, 2 }
 0x21a   : > { %6803 = vst [vmem:[#allocation19_spill] sm:$0xff] %v5585_v0  ;;  %6804 = vst [vmem:[#allocation20_spill] sm:$0xff] %v5591_v55  ;;  %4469 = vrot.lane.b32.xlu1 %v4468_v44, %s4699_s16  ;;  %v4478_v35 = vpack.i.bf16 %v1796_v45, %v1794_v25  ;;  %v1562_v8 = vmax.f32 %v5579_v42, 0.0  ;;  %v5598_v51 = vsel %vm1608_vm5, 0.0, %v1630_v22  ;;  %v1560_v50 = vmax.f32 %v5582_v4, 0.0 }
 0x21b   : > { %v5565_v37 = vpop.f32.mrb[20].mxu0  ;;  %v1563_v18 = vmax.f32 %v5585_v0, 0.0  ;;  %v1980_v13 = vsel %vm531_vm0, %v1978_v33, %v1979_v62  ;;  %v1728_v29 = vsel %vm1608_vm5, %v1631_v21, 0.0  ;;  %v5605_v6 = vsel %vm1608_vm5, %v1628_v15, 0.0 }
 0x21c   : > { %v5572_v59 = vpop.f32.mrb[21].mxu0  ;;  %4479 = vrot.lane.b32.xlu0 %v4478_v35, %s4699_s16  ;;  %v1982_v12 = vsel %vm531_vm0, %v1979_v62, %v1981_v40  ;;  %v1561_v61 = vmax.f32 %v5591_v55, 0.0  ;;  %v1636_v3 = vrot.slane %v1562_v8, 7  ;;  %v1974_v25 = vrot.slane %v5518_v54, 2 }
 0x21d   : > { %v3892_v58 = vpop.f32.mrb[22].mxu0  ;;  %v1637_v22 = vrot.slane %v1563_v18, 7  ;;  %v4473_v44 = vpack.i.bf16 %v1982_v12, %v1980_v13  ;;  %v5614_v33 = vsel %vm1608_vm5, 0.0, %v1627_v57  ;;  %v1633_v21 = vrot.slane %v1560_v50, 7 }
 0x21e   : > { %v1390_v31 = vpop.f32.mrb[23].mxu0  ;;  %v1634_v48 = vrot.slane %v1561_v61, 7  ;;  %v1808_v15 = vrot.slane %v5555_v14, 1  ;;  %v1810_v35 = vrot.slane %v1728_v29, 1  ;;  %v1805_v40 = vrot.slane %v5605_v6, 1 }
 0x21f   : > { %v5621_v62 = vsel %vm1608_vm5, %v1636_v3, %v1637_v22  ;;  %4474 = vrot.lane.b32.xlu1 %v4473_v44, %s4702_s15  ;;  %v1803_v8 = vrot.slane %v5569_v24, 1  ;;  %v1807_v57 = vrot.slane %v5598_v51, 1  ;;  %v1988_v12 = vrot.slane %v5598_v51, 2 }
 0x220   : > { %v5629_v50 = vsel %vm1608_vm5, %v1633_v21, %v1634_v48  ;;  %v1802_v61 = vrot.slane %v5614_v33, 1  ;;  %v1991_v55 = vrot.slane %v1728_v29, 2  ;;  %v1975_v4 = vsel %vm531_vm0, %v1973_v20, %v1974_v25 }
 0x221   : > { %v1986_v44 = vrot.slane %v5605_v6, 2  ;;  %v5638_v42 = vsel %vm1608_vm5, %v1637_v22, 0.0  ;;  %v1977_v1 = vsel %vm531_vm0, %v1974_v25, %v1976_v10  ;;  %v1809_v34 = vsel %vm332_vm1, %v1807_v57, %v1808_v15 }
 0x222   : > { %v4483_v27 = vpack.i.bf16 %v1977_v1, %v1975_v4  ;;  %v1811_v60 = vsel %vm332_vm1, %v1808_v15, %v1810_v35  ;;  %v1804_v9 = vsel %vm332_vm1, %v1802_v61, %v1803_v8  ;;  %v1806_v47 = vsel %vm332_vm1, %v1803_v8, %v1805_v40 }
 0x223   : > { %v5611_v45 = vpop.f32.mrb[24].mxu0  ;;  %v4488_v19 = vpack.i.bf16 %v1811_v60, %v1809_v34  ;;  %v4498_v29 = vpack.i.bf16 %v1806_v47, %v1804_v9  ;;  %v5647_v20 = vadd.f32 %v5565_v37, %v5382_v11  ;;  %v5651_v6 = vadd.f32 %v5382_v11, %v5572_v59 }
 0x224   : > { %v5617_v0 = vpop.f32.mrb[25].mxu0  ;;  %4484 = vrot.lane.b32.xlu0 %v4483_v27, %s4702_s15  ;;  %v5655_v1 = vadd.f32 %v3892_v58, %v5382_v11  ;;  %v1989_v4 = vrot.slane %v5555_v14, 2  ;;  %v5659_v10 = vadd.f32 %v5382_v11, %v1390_v31  ;;  %v1984_v47 = vrot.slane %v5569_v24, 2 }
 0x225   : > { %v5625_v18 = vpop.f32.mrb[26].mxu0  ;;  %6805 = vst [vmem:[#allocation21_spill] sm:$0xff] %v5647_v20  ;;  %6806 = vst [vmem:[#allocation22_spill] sm:$0xff] %v5651_v6  ;;  %v1983_v60 = vrot.slane %v5614_v33, 2  ;;  %4489 = vrot.lane.b32.xlu1 %v4488_v19, %s4699_s16  ;;  %v1566_v34 = vmax.f32 %v5647_v20, 0.0  ;;  %v5670_v27 = vsel %vm1608_vm5, 0.0, %v1636_v3 }
 0x226   : > { %v5631_v13 = vpop.f32.mrb[27].mxu0  ;;  %6807 = vst [vmem:[#allocation23_spill] sm:$0xff] %v5655_v1  ;;  %6808 = vst [vmem:[#allocation24_spill] sm:$0xff] %v5659_v10  ;;  %v1567_v59 = vmax.f32 %v5655_v1, 0.0  ;;  %v1990_v58 = vsel %vm531_vm0, %v1988_v12, %v1989_v4  ;;  %v1992_v31 = vsel %vm531_vm0, %v1989_v4, %v1991_v55  ;;  %v1820_v25 = vrot.slane %v5638_v42, 1 }
 0x227   : > { %v5679_v15 = vsel %vm1608_vm5, %v1634_v48, 0.0  ;;  %v1564_v19 = vmax.f32 %v5651_v6, 0.0  ;;  %v4493_v35 = vpack.i.bf16 %v1992_v31, %v1990_v58  ;;  %v1565_v8 = vmax.f32 %v5659_v10, 0.0 }
 0x228   : > { %4499 = vrot.lane.b32.xlu0 %v4498_v29, %s4699_s16  ;;  %v1643_v3 = vrot.slane %v1567_v59, 7  ;;  %v1985_v57 = vsel %vm531_vm0, %v1983_v60, %v1984_v47  ;;  %v1987_v55 = vsel %vm531_vm0, %v1984_v47, %v1986_v44  ;;  %v1817_v12 = vrot.slane %v5670_v27, 1 }
 0x229   : > { %v5690_v61 = vsel %vm1608_vm5, 0.0, %v1633_v21  ;;  %v1642_v48 = vrot.slane %v1566_v34, 7  ;;  %4494 = vrot.lane.b32.xlu1 %v4493_v35, %s4702_s15  ;;  %v1818_v4 = vrot.slane %v5621_v62, 1  ;;  %v1815_v58 = vrot.slane %v5679_v15, 1 }
 0x22a   : > { %v4503_v29 = vpack.i.bf16 %v1987_v55, %v1985_v57  ;;  %v1639_v59 = vrot.slane %v1564_v19, 7  ;;  %v1640_v60 = vrot.slane %v1565_v8, 7  ;;  %v1812_v47 = vrot.slane %v5690_v61, 1 }
 0x22b   : > { %v5662_v9 = vpop.f32.mrb[28].mxu0  ;;  %v5696_v31 = vsel %vm1608_vm5, %v1642_v48, %v1643_v3  ;;  %v1819_v44 = vsel %vm332_vm1, %v1817_v12, %v1818_v4  ;;  %v1821_v21 = vsel %vm332_vm1, %v1818_v4, %v1820_v25  ;;  %v1813_v34 = vrot.slane %v5629_v50, 1 }
 0x22c   : > { %v5667_v37 = vpop.f32.mrb[29].mxu0  ;;  %4504 = vrot.lane.b32.xlu0 %v4503_v29, %s4702_s15  ;;  %v5704_v35 = vsel %vm1608_vm5, %v1639_v59, %v1640_v60  ;;  %v4508_v10 = vpack.i.bf16 %v1821_v21, %v1819_v44  ;;  %v5708_v19 = vadd.f32 %v5611_v45, %v5382_v11  ;;  %v1998_v8 = vrot.slane %v5670_v27, 2 }
 0x22d   : > { %v5675_v22 = vpop.f32.mrb[30].mxu0  ;;  %v2001_v57 = vrot.slane %v5638_v42, 2  ;;  %v1814_v55 = vsel %vm332_vm1, %v1812_v47, %v1813_v34  ;;  %v1816_v12 = vsel %vm332_vm1, %v1813_v34, %v1815_v58  ;;  %v1993_v25 = vrot.slane %v5690_v61, 2 }
 0x22e   : > { %v5682_v40 = vpop.f32.mrb[31].mxu0  ;;  %6809 = vst [vmem:[#allocation25_spill] sm:$0xff] %v5708_v19  ;;  %4509 = vrot.lane.b32.xlu1 %v4508_v10, %s4699_s16  ;;  %v4518_v4 = vpack.i.bf16 %v1816_v12, %v1814_v55  ;;  %v1570_v29 = vmax.f32 %v5708_v19, 0.0  ;;  %v5719_v44 = vadd.f32 %v5382_v11, %v5617_v0  ;;  %v1996_v45 = vrot.slane %v5679_v15, 2 }
 0x22f   : > { %v5724_v42 = vadd.f32 %v5625_v18, %v5382_v11  ;;  %v1999_v47 = vrot.slane %v5621_v62, 2  ;;  %v5729_v58 = vadd.f32 %v5382_v11, %v5631_v13  ;;  %v5732_v10 = vsel %vm1608_vm5, 0.0, %v1642_v48 }
 0x230   : > { %6810 = vst [vmem:[#allocation26_spill] sm:$0xff] %v5719_v44  ;;  %v1732_v21 = vsel %vm1608_vm5, %v1643_v3, 0.0  ;;  %4519 = vrot.lane.b32.xlu0 %v4518_v4, %s4699_s16  ;;  %v1568_v0 = vmax.f32 %v5719_v44, 0.0  ;;  %v1994_v15 = vrot.slane %v5629_v50, 2  ;;  %v1828_v13 = vrot.slane %v5696_v31, 1 }
 0x231   : > { %6811 = vst [vmem:[#allocation27_spill] sm:$0xff] %v5724_v42  ;;  %6812 = vst [vmem:[#allocation28_spill] sm:$0xff] %v5729_v58  ;;  %v1571_v18 = vmax.f32 %v5724_v42, 0.0  ;;  %v2000_v34 = vsel %vm531_vm0, %v1998_v8, %v1999_v47  ;;  %v2002_v55 = vsel %vm531_vm0, %v1999_v47, %v2001_v57  ;;  %v5743_v12 = vsel %vm1608_vm5, 0.0, %v1639_v59 }
 0x232   : > { %v5746_v48 = vsel %vm1608_vm5, %v1640_v60, 0.0  ;;  %v1648_v3 = vrot.slane %v1570_v29, 7  ;;  %v4513_v4 = vpack.i.bf16 %v2002_v55, %v2000_v34  ;;  %v1827_v44 = vrot.slane %v5732_v10, 1 }
 0x233   : > { %v1830_v19 = vrot.slane %v1732_v21, 1  ;;  %v1649_v1 = vrot.slane %v1571_v18, 7  ;;  %v1569_v42 = vmax.f32 %v5729_v58, 0.0  ;;  %v2008_v8 = vrot.slane %v5732_v10, 2 }
 0x234   : > { %v1645_v6 = vrot.slane %v1568_v0, 7  ;;  %4514 = vrot.lane.b32.xlu1 %v4513_v4, %s4702_s15  ;;  %v1995_v57 = vsel %vm531_vm0, %v1993_v25, %v1994_v15  ;;  %v1997_v59 = vsel %vm531_vm0, %v1994_v15, %v1996_v45  ;;  %v1822_v60 = vrot.slane %v5743_v12, 1 }
 0x235   : > { %v1825_v29 = vrot.slane %v5746_v48, 1  ;;  %v5757_v47 = vsel %vm1608_vm5, %v1648_v3, %v1649_v1  ;;  %v1829_v18 = vsel %vm332_vm1, %v1827_v44, %v1828_v13  ;;  %v2003_v34 = vrot.slane %v5743_v12, 2 }
 0x236   : > { %v5762_v55 = vsel %vm1608_vm5, 0.0, %v1648_v3  ;;  %v1646_v0 = vrot.slane %v1569_v42, 7  ;;  %v4523_v4 = vpack.i.bf16 %v1997_v59, %v1995_v57  ;;  %v1831_v25 = vsel %vm332_vm1, %v1828_v13, %v1830_v19 }
 0x237   : > { %v1823_v45 = vrot.slane %v5704_v35, 1  ;;  %v5768_v15 = vadd.f32 %v5662_v9, %v5382_v11  ;;  %v5772_v58 = vadd.f32 %v5382_v11, %v5667_v37  ;;  %v5775_v44 = vsel %vm1608_vm5, 0.0, %v1645_v6 }
 0x238   : > { %v5778_v3 = vsel %vm1608_vm5, %v1645_v6, %v1646_v0  ;;  %4524 = vrot.lane.b32.xlu0 %v4523_v4, %s4702_s15  ;;  %v4528_v42 = vpack.i.bf16 %v1831_v25, %v1829_v18  ;;  %v5783_v19 = vadd.f32 %v5675_v22, %v5382_v11  ;;  %v2011_v13 = vrot.slane %v1732_v21, 2 }
 0x239   : > { %6813 = vst [vmem:[#allocation29_spill] sm:$0xff] %v5768_v15  ;;  %6814 = vst [vmem:[#allocation30_spill] sm:$0xff] %v5772_v58  ;;  %v2006_v9 = vrot.slane %v5746_v48, 2  ;;  %v1824_v57 = vsel %vm332_vm1, %v1822_v60, %v1823_v45  ;;  %v1826_v37 = vsel %vm332_vm1, %v1823_v45, %v1825_v29  ;;  %v1837_v59 = vrot.slane %v5762_v55, 1 }
 0x23a   : > { %6815 = vst [vmem:[#allocation31_spill] sm:$0xff] %v5783_v19  ;;  %v2018_v20 = vrot.slane %v5762_v55, 2  ;;  %4529 = vrot.lane.b32.xlu1 %v4528_v42, %s4699_s16  ;;  %v4538_v6 = vpack.i.bf16 %v1826_v37, %v1824_v57  ;;  %v1574_v18 = vmax.f32 %v5768_v15, 0.0  ;;  %v1832_v4 = vrot.slane %v5775_v44, 1 }
 0x23b   : > { %v1572_v22 = vmax.f32 %v5772_v58, 0.0  ;;  %v1575_v21 = vmax.f32 %v5783_v19, 0.0  ;;  %v2009_v48 = vrot.slane %v5696_v31, 2  ;;  %v1734_v60 = vsel %vm1608_vm5, %v1649_v1, 0.0 }
 0x23c   : > { %v1733_v29 = vsel %vm1608_vm5, %v1646_v0, 0.0  ;;  %4539 = vrot.lane.b32.xlu0 %v4538_v6, %s4699_s16  ;;  %v1654_v25 = vrot.slane %v1574_v18, 7  ;;  %v5801_v45 = vadd.f32 %v5382_v11, %v5682_v40  ;;  %v2004_v19 = vrot.slane %v5704_v35, 2 }
 0x23d   : > { %v1655_v42 = vrot.slane %v1575_v21, 7  ;;  %v2010_v57 = vsel %vm531_vm0, %v2008_v8, %v2009_v48  ;;  %v2012_v37 = vsel %vm531_vm0, %v2009_v48, %v2011_v13  ;;  %v1838_v6 = vrot.slane %v5757_v47, 1 }
 0x23e   : > { %6816 = vst [vmem:[#allocation32_spill] sm:$0xff] %v5801_v45  ;;  %v5807_v58 = vsel %vm1608_vm5, 0.0, %v1654_v25  ;;  %v4533_v1 = vpack.i.bf16 %v2012_v37, %v2010_v57  ;;  %v1573_v0 = vmax.f32 %v5801_v45, 0.0  ;;  %v2013_v18 = vrot.slane %v5775_v44, 2 }
 0x23f   : > { %v1840_v15 = vrot.slane %v1734_v60, 1  ;;  %v1651_v11 = vrot.slane %v1572_v22, 7  ;;  %v5813_v40 = vsel %vm1608_vm5, %v1654_v25, %v1655_v42  ;;  %v2021_v8 = vrot.slane %v1734_v60, 2 }
 0x240   : > { %v1835_v21 = vrot.slane %v1733_v29, 1  ;;  %v1736_v13 = vsel %vm1608_vm5, %v1655_v42, 0.0  ;;  %4534 = vrot.lane.b32.xlu1 %v4533_v1, %s4702_s15  ;;  %v1652_v48 = vrot.slane %v1573_v0, 7  ;;  %v2016_v28 = vrot.slane %v1733_v29, 2 }
 0x241   : > { %v1847_v57 = vrot.slane %v5807_v58, 1  ;;  %v2005_v37 = vsel %vm531_vm0, %v2003_v34, %v2004_v19  ;;  %v2007_v45 = vsel %vm531_vm0, %v2004_v19, %v2006_v9  ;;  %v1839_v60 = vsel %vm332_vm1, %v1837_v59, %v1838_v6 }
 0x242   : > { %v5821_v23 = vsel %vm1608_vm5, %v1651_v11, %v1652_v48  ;;  %v1735_v22 = vsel %vm1608_vm5, %v1652_v48, 0.0  ;;  %v4543_v25 = vpack.i.bf16 %v2007_v45, %v2005_v37  ;;  %v5826_v42 = vsel %vm1608_vm5, 0.0, %v1651_v11 }
 0x243   : > { %v1850_v1 = vrot.slane %v1736_v13, 1  ;;  %v1841_v29 = vsel %vm332_vm1, %v1838_v6, %v1840_v15  ;;  %v1833_v0 = vrot.slane %v5778_v3, 1  ;;  %v2019_v19 = vrot.slane %v5757_v47, 2 }
 0x244   : > { %4544 = vrot.lane.b32.xlu0 %v4543_v25, %s4702_s15  ;;  %v4548_v34 = vpack.i.bf16 %v1841_v29, %v1839_v60  ;;  %v2014_v9 = vrot.slane %v5778_v3, 2  ;;  %v1848_v48 = vrot.slane %v5813_v40, 1  ;;  %v1845_v45 = vrot.slane %v1735_v22, 1 }
 0x245   : > { %v1834_v59 = vsel %vm332_vm1, %v1832_v4, %v1833_v0  ;;  %v1836_v11 = vsel %vm332_vm1, %v1833_v0, %v1835_v21  ;;  %v1843_v37 = vrot.slane %v5821_v23, 1  ;;  %v1842_v15 = vrot.slane %v5826_v42, 1 }
 0x246   : > { %4549 = vrot.lane.b32.xlu1 %v4548_v34, %s4699_s16  ;;  %v4558_v6 = vpack.i.bf16 %v1836_v11, %v1834_v59  ;;  %v2020_v25 = vsel %vm531_vm0, %v2018_v20, %v2019_v19  ;;  %v2022_v60 = vsel %vm531_vm0, %v2019_v19, %v2021_v8  ;;  %v2015_v29 = vsel %vm531_vm0, %v2013_v18, %v2014_v9 }
 0x247   : > { %v2017_v56 = vsel %vm531_vm0, %v2014_v9, %v2016_v28  ;;  %v1849_v46 = vsel %vm332_vm1, %v1847_v57, %v1848_v48  ;;  %v1851_v4 = vsel %vm332_vm1, %v1848_v48, %v1850_v1  ;;  %v4553_v21 = vpack.i.bf16 %v2022_v60, %v2020_v25 }
 0x248   : > { %4559 = vrot.lane.b32.xlu0 %v4558_v6, %s4699_s16  ;;  %v2031_v0 = vrot.slane %v1736_v13, 2  ;;  %v1844_v41 = vsel %vm332_vm1, %v1842_v15, %v1843_v37  ;;  %v1846_v34 = vsel %vm332_vm1, %v1843_v37, %v1845_v45  ;;  %v2029_v20 = vrot.slane %v5813_v40, 2 }
 0x249   : > { %v4563_v8 = vpack.i.bf16 %v2017_v56, %v2015_v29  ;;  %v4568_v18 = vpack.i.bf16 %v1851_v4, %v1849_v46  ;;  %v2028_v28 = vrot.slane %v5807_v58, 2  ;;  %v2026_v19 = vrot.slane %v1735_v22, 2 }
 0x24a   : > { %4554 = vrot.lane.b32.xlu1 %v4553_v21, %s4702_s15  ;;  %v2024_v57 = vrot.slane %v5821_v23, 2  ;;  %v4573_v1 = vpack.i.bf16 %v1846_v34, %v1844_v41  ;;  %v2023_v13 = vrot.slane %v5826_v42, 2  ;;  %v2032_v48 = vsel %vm531_vm0, %v2029_v20, %v2031_v0 }
 0x24b   : > { %v2030_v9 = vsel %vm531_vm0, %v2028_v28, %v2029_v20  ;;  %v6817_v59 = vmov 0.0  }
 0x24c   : > { %4564 = vrot.lane.b32.xlu0 %v4563_v8, %s4702_s15  ;;  %v2025_v45 = vsel %vm531_vm0, %v2023_v13, %v2024_v57  ;;  %v2027_v46 = vsel %vm531_vm0, %v2024_v57, %v2026_v19  ;;  %v4583_v56 = vpack.i.bf16 %v2032_v48, %v2030_v9  ;;  %v1951_v41 = vrot.slane %v6817_v59, 2  ;;  %4049 = vmatprep.mubr.msk.bf16.mxu0 %vm4703_vm8, %v6817_v59 }
 0x24d   : > { %v4578_v22 = vpack.i.bf16 %v2027_v46, %v2025_v45  ;;  %v1770_v11 = vrot.slane %v6817_v59, 1  ;;  %v4604_v46 = vld [vmem:[%s6722_s2 + $0x8] sm:$0xff]  }
 0x24e   : > { %4569 = vrot.lane.b32.xlu1 %v4568_v18, %s4699_s16 }
 0x250   : > { %4574 = vrot.lane.b32.xlu0 %v4573_v1, %s4699_s16 }
 0x252   : > { %4584 = vrot.lane.b32.xlu1 %v4583_v56, %s4702_s15 }
 0x254   : > { %4579 = vrot.lane.b32.xlu0 %v4578_v22, %s4702_s15 }
 0x256   : > { %2033 = vrot.lane.b32.xlu1 %v1951_v41, %s4702_s15  ;;  %v4605_v41 = vld [vmem:[%s6722_s2 + $0x10] sm:$0xff]   ;;  %s3645_s15 = sshll.u32 %s4758_s22, 12 }
 0x257   : > { %s6657_s23 = scalar_lea.hbm %s6725_s5, %s3645_s15 }
 0x258   : > { %1852 = vrot.lane.b32.xlu0 %v1770_v11, %s4699_s16  ;;  %s3375_s16 = sshll.u32 %s6618_s14, 4  ;;  %s6659_s16 = int_to_ptr.vmem [resolvable:$true] %s3375_s16 }
 0x259   : > { %s4635_s26 = scalar_lea.vmem %s6659_s16, 4096  ;;  %p4642_p0 = scmp.lt.s32.totalorder %s6659_s16, %s4640_s6 }
 0x25a   : > { %p4636_p11 = scmp.ne.s32.totalorder %s6659_s16, %s4635_s26  ;;  %p4643_p1 = scmp.lt.s32.totalorder %s4641_s7, %s4635_s26 }
 0x25c   : > { %p4637_p12 = pnand %p4636_p11, %p4775_p5  ;;  %p4644_p2 = por %p4643_p1, %p4642_p0 }
 0x25e   : > { %p4638_p13 = pneg %p4637_p12 }
 0x260   : > { %p4645_p3 = pnand %p4644_p2, %p4638_p13 }
 0x275   : > { %v4430_v37 = vpop.permute.xlu1 %4429 }
 0x276   : > { %v4432_v25 = vunpack.i.h.bf16 %v4430_v37  ;;  %v4431_v60 = vunpack.i.l.bf16 %v4430_v37 }
 0x277   : > { %v4440_v15 = vpop.permute.xlu0 %4439 }
 0x278   : > { %v4442_v29 = vunpack.i.h.bf16 %v4440_v15  ;;  %v4441_v4 = vunpack.i.l.bf16 %v4440_v15  ;;  %v2136_v20 = vsel %vm767_vm3, %v5401_v17, %v4432_v25  ;;  %v2135_v8 = vsel %vm767_vm3, %v5407_v38, %v4431_v60 }
 0x27a   : > { %v2133_v13 = vsel %vm767_vm3, %v5434_v39, %v4441_v4  ;;  %v2134_v9 = vsel %vm767_vm3, %v5410_v53, %v4442_v29 }
 0x27b   : > { %v4435_v6 = vpop.permute.xlu1 %4434 }
 0x27c   : > { %v4437_v21 = vunpack.i.h.bf16 %v4435_v6  ;;  %v4436_v0 = vunpack.i.l.bf16 %v4435_v6 }
 0x27e   : > { %v4445_v34 = vpop.permute.xlu0 %4444  ;;  %v2169_v19 = vsel %vm2165_vm6, %v2135_v8, %v4436_v0  ;;  %v2170_v57 = vsel %vm2165_vm6, %v2136_v20, %v4437_v21  ;;  %v4606_v21 = vld [vmem:[%s6722_s2 + $0x18] sm:$0xff]  }
 0x27f   : > { %v4447_v18 = vunpack.i.h.bf16 %v4445_v34  ;;  %v4446_v28 = vunpack.i.l.bf16 %v4445_v34  ;;  %v5880_v38 = vpack.c.bf16 %v2170_v57, %v2169_v19 }
 0x280   : > { %v4450_v1 = vpop.permute.xlu1 %4449 }
 0x281   : > { %v2167_v48 = vsel %vm2165_vm6, %v2133_v13, %v4446_v28  ;;  %v2168_v17 = vsel %vm2165_vm6, %v2134_v9, %v4447_v18  ;;  %v4452_v39 = vunpack.i.h.bf16 %v4450_v1  ;;  %v4451_v22 = vunpack.i.l.bf16 %v4450_v1  ;;  %v4608_v1 = vld [vmem:[%s6722_s2 + $0x28] sm:$0xff]  }
 0x282   : > { %v5878_v45 = vpack.c.bf16 %v2168_v17, %v2167_v48  ;;  %v4460_v56 = vpop.permute.xlu0 %4459 }
 0x283   : > { %v4462_v11 = vunpack.i.h.bf16 %v4460_v56  ;;  %v4461_v37 = vunpack.i.l.bf16 %v4460_v56  ;;  %v2140_v60 = vsel %vm767_vm3, %v5455_v49, %v4452_v39  ;;  %v5925_v39 = vld [vmem:[%s6722_s2 + $0x60] sm:$0xff]  }
 0x284   : > { %3913 = vmatprep.mubr.msk.bf16.mxu1 %vm2277_vm7, %v5878_v45 }
 0x285   : > { %3914 = vmatmul.mubr.msk.bf16.vlgmr.msra.gmra.mrb[0].mxu1 %vm2277_vm7, %v5880_v38  ;;  %v2138_v0 = vsel %vm767_vm3, %v5458_v16, %v4462_v11  ;;  %v2137_v34 = vsel %vm767_vm3, %v5501_v32, %v4461_v37  ;;  %v4607_v16 = vld [vmem:[%s6722_s2 + $0x20] sm:$0xff]  }
 0x286   : > { %3946 = vmatpush3.bf16.msra.mxu1 %v5490_v63  ;;  %v4455_v53 = vpop.permute.xlu1 %4454  ;;  %v2139_v63 = vsel %vm767_vm3, %v5463_v5, %v4451_v22 }
 0x287   : > { %3947 = vmatprep.subr.bf16.mxu1 %v4604_v46  ;;  %v4457_v15 = vunpack.i.h.bf16 %v4455_v53  ;;  %v4456_v6 = vunpack.i.l.bf16 %v4455_v53 }
 0x289   : > { %v2173_v20 = vsel %vm2165_vm6, %v2139_v63, %v4456_v6  ;;  %v2174_v49 = vsel %vm2165_vm6, %v2140_v60, %v4457_v15 }
 0x28a   : > { %v4465_v25 = vpop.permute.xlu0 %4464  ;;  %3948 = vmatpush3.bf16.msra.mxu1 %v4604_v46  ;;  %v5910_v19 = vpack.c.bf16 %v2174_v49, %v2173_v20 }
 0x28b   : > { %v4467_v29 = vunpack.i.h.bf16 %v4465_v25  ;;  %v4466_v4 = vunpack.i.l.bf16 %v4465_v25  ;;  %3949 = vmatprep.subr.bf16.mxu1 %v4605_v41 }
 0x28c   : > { %v4470_v8 = vpop.permute.xlu1 %4469 }
 0x28d   : > { %v2171_v5 = vsel %vm2165_vm6, %v2137_v34, %v4466_v4  ;;  %v2172_v18 = vsel %vm2165_vm6, %v2138_v0, %v4467_v29  ;;  %v4472_v13 = vunpack.i.h.bf16 %v4470_v8  ;;  %v4471_v9 = vunpack.i.l.bf16 %v4470_v8 }
 0x28e   : > { %v5908_v28 = vpack.c.bf16 %v2172_v18, %v2171_v5  ;;  %3950 = vmatpush3.bf16.msra.mxu1 %v4605_v41  ;;  %v4480_v32 = vpop.permute.xlu0 %4479 }
 0x28f   : > { %3951 = vmatprep.subr.bf16.mxu1 %v4606_v21  ;;  %v4482_v48 = vunpack.i.h.bf16 %v4480_v32  ;;  %v4481_v17 = vunpack.i.l.bf16 %v4480_v32  ;;  %v2144_v22 = vsel %vm767_vm3, %v5508_v43, %v4472_v13  ;;  %v2143_v41 = vsel %vm767_vm3, %v5535_v36, %v4471_v9 }
 0x290   : > { %3917 = vmatprep.mubr.msk.bf16.mxu1 %vm2277_vm7, %v5908_v28 }
 0x291   : > { %3918 = vmatmul.mubr.msk.bf16.gmra.mrb[4].mxu1 %vm2277_vm7, %v5910_v19  ;;  %v4475_v57 = vpop.permute.xlu1 %4474  ;;  %v2142_v6 = vsel %vm767_vm3, %v5518_v54, %v4482_v48  ;;  %v2141_v25 = vsel %vm767_vm3, %v5559_v2, %v4481_v17 }
 0x292   : > { %3952 = vmatpush3.bf16.msra.mxu1 %v4606_v21  ;;  %v4477_v46 = vunpack.i.h.bf16 %v4475_v57  ;;  %v4476_v56 = vunpack.i.l.bf16 %v4475_v57 }
 0x293   : > { %3953 = vmatprep.subr.bf16.mxu1 %v4607_v16 }
 0x294   : > { %v2177_v60 = vsel %vm2165_vm6, %v2143_v41, %v4476_v56  ;;  %v2178_v63 = vsel %vm2165_vm6, %v2144_v22, %v4477_v46 }
 0x295   : > { %v5942_v21 = vpack.c.bf16 %v2178_v63, %v2177_v60 }
 0x296   : > { %3954 = vmatpush3.bf16.msra.mxu1 %v4607_v16  ;;  %v4485_v53 = vpop.permute.xlu0 %4484 }
 0x297   : > { %3955 = vmatprep.subr.bf16.mxu1 %v4608_v1  ;;  %v4487_v11 = vunpack.i.h.bf16 %v4485_v53  ;;  %v4486_v37 = vunpack.i.l.bf16 %v4485_v53  ;;  %v4490_v15 = vpop.permute.xlu1 %4489 }
 0x298   : > { %v4492_v54 = vunpack.i.h.bf16 %v4490_v15  ;;  %v4491_v0 = vunpack.i.l.bf16 %v4490_v15 }
 0x299   : > { %v2175_v29 = vsel %vm2165_vm6, %v2141_v25, %v4486_v37  ;;  %v2176_v43 = vsel %vm2165_vm6, %v2142_v6, %v4487_v11 }
 0x29a   : > { %3956 = vmatpush3.bf16.msra.mxu1 %v4608_v1  ;;  %v5939_v4 = vpack.c.bf16 %v2176_v43, %v2175_v29  ;;  %v4500_v36 = vpop.permute.xlu0 %4499  ;;  %v2148_v18 = vsel %vm767_vm3, %v5555_v14, %v4492_v54  ;;  %v2147_v16 = vsel %vm767_vm3, %v5598_v51, %v4491_v0 }
 0x29b   : > { %3989 = vmatprep.subr.bf16.mxu1 %v5925_v39  ;;  %v4495_v34 = vpop.permute.xlu1 %4494  ;;  %v4502_v2 = vunpack.i.h.bf16 %v4500_v36  ;;  %v4501_v20 = vunpack.i.l.bf16 %v4500_v36 }
 0x29c   : > { %3921 = vmatprep.mubr.msk.bf16.mxu1 %vm2277_vm7, %v5939_v4  ;;  %v4497_v49 = vunpack.i.h.bf16 %v4495_v34  ;;  %v4496_v8 = vunpack.i.l.bf16 %v4495_v34 }
 0x29d   : > { %3922 = vmatmul.mubr.msk.bf16.gmra.mrb[8].mxu1 %vm2277_vm7, %v5942_v21  ;;  %v2146_v1 = vsel %vm767_vm3, %v5569_v24, %v4502_v2  ;;  %v2145_v13 = vsel %vm767_vm3, %v5614_v33, %v4501_v20 }
 0x29e   : > { %v4505_v5 = vpop.permute.xlu0 %4504  ;;  %v2181_v9 = vsel %vm2165_vm6, %v2147_v16, %v4496_v8  ;;  %v2182_v48 = vsel %vm2165_vm6, %v2148_v18, %v4497_v49 }
 0x29f   : > { %v4507_v32 = vunpack.i.h.bf16 %v4505_v5  ;;  %v4506_v57 = vunpack.i.l.bf16 %v4505_v5  ;;  %v5962_v51 = vpack.c.bf16 %v2182_v48, %v2181_v9 }
 0x2a0   : > { %v4510_v14 = vpop.permute.xlu1 %4509 }
 0x2a1   : > { %v2179_v17 = vsel %vm2165_vm6, %v2145_v13, %v4506_v57  ;;  %v2180_v46 = vsel %vm2165_vm6, %v2146_v1, %v4507_v32  ;;  %v4512_v53 = vunpack.i.h.bf16 %v4510_v14  ;;  %v4511_v22 = vunpack.i.l.bf16 %v4510_v14 }
 0x2a2   : > { %v5960_v56 = vpack.c.bf16 %v2180_v46, %v2179_v17  ;;  %v4520_v24 = vpop.permute.xlu0 %4519 }
 0x2a3   : > { %v4522_v41 = vunpack.i.h.bf16 %v4520_v24  ;;  %v4521_v11 = vunpack.i.l.bf16 %v4520_v24  ;;  %v2152_v25 = vsel %vm767_vm3, %v5621_v62, %v4512_v53  ;;  %v2151_v60 = vsel %vm767_vm3, %v5670_v27, %v4511_v22 }
 0x2a4   : > { %3925 = vmatprep.mubr.msk.bf16.mxu1 %vm2277_vm7, %v5960_v56 }
 0x2a5   : > { %3926 = vmatmul.mubr.msk.bf16.gmra.mrb[12].mxu1 %vm2277_vm7, %v5962_v51  ;;  %v2150_v43 = vsel %vm767_vm3, %v5629_v50, %v4522_v41  ;;  %v2149_v36 = vsel %vm767_vm3, %v5690_v61, %v4521_v11 }
 0x2a6   : > { %v4515_v33 = vpop.permute.xlu1 %4514 }
 0x2a7   : > { %v4517_v37 = vunpack.i.h.bf16 %v4515_v33  ;;  %v4516_v15 = vunpack.i.l.bf16 %v4515_v33 }
 0x2a9   : > { %v2185_v54 = vsel %vm2165_vm6, %v2151_v60, %v4516_v15  ;;  %v2186_v0 = vsel %vm2165_vm6, %v2152_v25, %v4517_v37 }
 0x2aa   : > { %v4525_v6 = vpop.permute.xlu0 %4524  ;;  %v5982_v27 = vpack.c.bf16 %v2186_v0, %v2185_v54 }
 0x2ab   : > { %v4527_v63 = vunpack.i.h.bf16 %v4525_v6  ;;  %v4526_v29 = vunpack.i.l.bf16 %v4525_v6 }
 0x2ac   : > { %v4530_v34 = vpop.permute.xlu1 %4529 }
 0x2ad   : > { %v2183_v2 = vsel %vm2165_vm6, %v2149_v36, %v4526_v29  ;;  %v2184_v62 = vsel %vm2165_vm6, %v2150_v43, %v4527_v63  ;;  %v4532_v61 = vunpack.i.h.bf16 %v4530_v34  ;;  %v4531_v8 = vunpack.i.l.bf16 %v4530_v34 }
 0x2ae   : > { %v5980_v20 = vpack.c.bf16 %v2184_v62, %v2183_v2  ;;  %v4540_v49 = vpop.permute.xlu0 %4539 }
 0x2af   : > { %v4542_v5 = vunpack.i.h.bf16 %v4540_v49  ;;  %v4541_v18 = vunpack.i.l.bf16 %v4540_v49  ;;  %v2156_v1 = vsel %vm767_vm3, %v5696_v31, %v4532_v61  ;;  %v2155_v13 = vsel %vm767_vm3, %v5732_v10, %v4531_v8 }
 0x2b0   : > { %3929 = vmatprep.mubr.msk.bf16.mxu1 %vm2277_vm7, %v5980_v20 }
 0x2b1   : > { %3930 = vmatmul.mubr.msk.bf16.gmra.mrb[16].mxu1 %vm2277_vm7, %v5982_v27  ;;  %v2154_v17 = vsel %vm767_vm3, %v5704_v35, %v4542_v5  ;;  %v2153_v46 = vsel %vm767_vm3, %v5743_v12, %v4541_v18 }
 0x2b2   : > { %v4535_v50 = vpop.permute.xlu1 %4534 }
 0x2b3   : > { %v4537_v16 = vunpack.i.h.bf16 %v4535_v50  ;;  %v4536_v32 = vunpack.i.l.bf16 %v4535_v50 }
 0x2b5   : > { %v2189_v14 = vsel %vm2165_vm6, %v2155_v13, %v4536_v32  ;;  %v2190_v24 = vsel %vm2165_vm6, %v2156_v1, %v4537_v16 }
 0x2b6   : > { %v4545_v57 = vpop.permute.xlu0 %4544  ;;  %v6002_v41 = vpack.c.bf16 %v2190_v24, %v2189_v14 }
 0x2b7   : > { %v4547_v9 = vunpack.i.h.bf16 %v4545_v57  ;;  %v4546_v48 = vunpack.i.l.bf16 %v4545_v57 }
 0x2b8   : > { %v4550_v33 = vpop.permute.xlu1 %4549 }
 0x2b9   : > { %v2187_v53 = vsel %vm2165_vm6, %v2153_v46, %v4546_v48  ;;  %v2188_v31 = vsel %vm2165_vm6, %v2154_v17, %v4547_v9  ;;  %v4552_v11 = vunpack.i.h.bf16 %v4550_v33  ;;  %v4551_v37 = vunpack.i.l.bf16 %v4550_v33 }
 0x2ba   : > { %v6000_v22 = vpack.c.bf16 %v2188_v31, %v2187_v53  ;;  %v4560_v10 = vpop.permute.xlu0 %4559 }
 0x2bb   : > { %v4562_v35 = vunpack.i.h.bf16 %v4560_v10  ;;  %v4561_v15 = vunpack.i.l.bf16 %v4560_v10  ;;  %v2160_v63 = vsel %vm767_vm3, %v5757_v47, %v4552_v11  ;;  %v2159_v29 = vsel %vm767_vm3, %v5762_v55, %v4551_v37  ;;  %v4610_v37 = vld [vmem:[%s6722_s2 + $0x68] sm:$0xff]  }
 0x2bc   : > { %3933 = vmatprep.mubr.msk.bf16.mxu1 %vm2277_vm7, %v6000_v22  ;;  %v4555_v12 = vpop.permute.xlu1 %4554 }
 0x2bd   : > { %3934 = vmatmul.mubr.msk.bf16.gmra.mrb[20].mxu1 %vm2277_vm7, %v6002_v41  ;;  %v4557_v6 = vunpack.i.h.bf16 %v4555_v12  ;;  %v4556_v25 = vunpack.i.l.bf16 %v4555_v12  ;;  %v2158_v54 = vsel %vm767_vm3, %v5778_v3, %v4562_v35  ;;  %v2157_v0 = vsel %vm767_vm3, %v5775_v44, %v4561_v15  ;;  %v4611_v35 = vld [vmem:[%s6722_s2 + $0x70] sm:$0xff]   ;;  %v4612_v15 = vld [vmem:[%s6722_s2 + $0x78] sm:$0xff]  }
 0x2be   : > { %v4565_v60 = vpop.permute.xlu0 %4564  ;;  %v4626_v12 = vld [vmem:[%s6723_s3 + $0x58] sm:$0xff]  }
 0x2bf   : > { %v4567_v43 = vunpack.i.h.bf16 %v4565_v60  ;;  %v4566_v36 = vunpack.i.l.bf16 %v4565_v60  ;;  %v2193_v34 = vsel %vm2165_vm6, %v2159_v29, %v4556_v25  ;;  %v2194_v2 = vsel %vm2165_vm6, %v2160_v63, %v4557_v6  ;;  %v4627_v6 = vld [vmem:[%s6723_s3 + $0x60] sm:$0xff]   ;;  %v4628_v25 = vld [vmem:[%s6723_s3 + $0x68] sm:$0xff]   ;;  %v4629_v60 = vld [vmem:[%s6723_s3 + $0x70] sm:$0xff]  }
 0x2c0   : > { %v4570_v62 = vpop.permute.xlu1 %4569  ;;  %v6022_v61 = vpack.c.bf16 %v2194_v2, %v2193_v34  ;;  %v4630_v63 = vld [vmem:[%s6723_s3 + $0x78] sm:$0xff]  }
 0x2c1   : > { %v2191_v49 = vsel %vm2165_vm6, %v2157_v0, %v4566_v36  ;;  %v2192_v47 = vsel %vm2165_vm6, %v2158_v54, %v4567_v43  ;;  %v4572_v8 = vunpack.i.h.bf16 %v4570_v62  ;;  %v4571_v5 = vunpack.i.l.bf16 %v4570_v62  ;;  %v6187_v43 = vld [vmem:[%s6724_s4 + $0x1] ss:$0 sm:$0xff] }
 0x2c2   : > { %v6020_v50 = vpack.c.bf16 %v2192_v47, %v2191_v49  ;;  %v4575_v55 = vpop.permute.xlu0 %4574 }
 0x2c3   : > { %v4577_v3 = vunpack.i.h.bf16 %v4575_v55  ;;  %v4576_v18 = vunpack.i.l.bf16 %v4575_v55  ;;  %v2164_v1 = vsel %vm767_vm3, %v5813_v40, %v4572_v8  ;;  %v2163_v13 = vsel %vm767_vm3, %v5807_v58, %v4571_v5 }
 0x2c4   : > { %3937 = vmatprep.mubr.msk.bf16.mxu1 %vm2277_vm7, %v6020_v50  ;;  %v4585_v44 = vpop.permute.xlu1 %4584 }
 0x2c5   : > { %3938 = vmatmul.mubr.msk.bf16.gmra.mrb[24].mxu1 %vm2277_vm7, %v6022_v61  ;;  %v4587_v16 = vunpack.i.h.bf16 %v4585_v44  ;;  %v4586_v32 = vunpack.i.l.bf16 %v4585_v44  ;;  %v2162_v17 = vsel %vm767_vm3, %v5821_v23, %v4577_v3  ;;  %v2161_v46 = vsel %vm767_vm3, %v5826_v42, %v4576_v18 }
 0x2c6   : > { %v4580_v57 = vpop.permute.xlu0 %4579 }
 0x2c7   : > { %v4582_v9 = vunpack.i.h.bf16 %v4580_v57  ;;  %v4581_v48 = vunpack.i.l.bf16 %v4580_v57  ;;  %v2197_v14 = vsel %vm2165_vm6, %v2163_v13, %v4586_v32  ;;  %v2198_v24 = vsel %vm2165_vm6, %v2164_v1, %v4587_v16 }
 0x2c8   : > { %v2034_v40 = vpop.permute.xlu1 %2033  ;;  %v2215_v58 = vpack.c.bf16 %v2198_v24, %v2197_v14 }
 0x2c9   : > { %v2195_v33 = vsel %vm2165_vm6, %v2161_v46, %v4581_v48  ;;  %v2196_v53 = vsel %vm2165_vm6, %v2162_v17, %v4582_v9 }
 0x2ca   : > { %v2214_v31 = vpack.c.bf16 %v2196_v53, %v2195_v33  ;;  %v1853_v10 = vpop.permute.xlu0 %1852 }
 0x2cb   : > { %v2132_v11 = vsel %vm767_vm3, 0.0, %v1853_v10 }
 0x2cc   : > { %3941 = vmatprep.mubr.msk.bf16.mxu1 %vm2277_vm7, %v2214_v31  ;;  %v2166_v23 = vsel %vm2165_vm6, %v2132_v11, %v2034_v40 }
 0x2cd   : > { %3942 = vmatmul.mubr.msk.bf16.gmra.mrb[28].mxu1 %vm2277_vm7, %v2215_v58  ;;  %v2199_v42 = vpack.c.bf16 %v2166_v23, %v2166_v23 }
 0x2cf   : > { %3957 = vmatprep.mubr.msk.bf16.mxu1 %vm2277_vm7, %v2199_v42 }
 0x2d5   : > { %3958 = vmatmul.mubr.msk.bf16.vlgmr.msra.gmra.mrb[0].mxu1 %vm2277_vm7, %v5878_v45  ;;  %v4613_v45 = vld [vmem:[%s6722_s2 + $0x80] sm:$0xff]  }
 0x2d6   : > { %3990 = vmatpush3.bf16.msra.mxu1 %v5925_v39  ;;  %3961 = vmatprep.mubr.msk.bf16.mxu1 %vm2277_vm7, %v5880_v38  ;;  %v4614_v39 = vld [vmem:[%s6722_s2 + $0x88] sm:$0xff]  }
 0x2d7   : > { %3991 = vmatprep.subr.bf16.mxu1 %v4610_v37 }
 0x2da   : > { %3992 = vmatpush3.bf16.msra.mxu1 %v4610_v37 }
 0x2db   : > { %3993 = vmatprep.subr.bf16.mxu1 %v4611_v35 }
 0x2dd   : > { %3962 = vmatmul.mubr.msk.bf16.gmra.mrb[4].mxu1 %vm2277_vm7, %v5908_v28 }
 0x2de   : > { %3965 = vmatprep.mubr.msk.bf16.mxu1 %vm2277_vm7, %v5910_v19  ;;  %3994 = vmatpush3.bf16.msra.mxu1 %v4611_v35 }
 0x2df   : > { %3995 = vmatprep.subr.bf16.mxu1 %v4612_v15 }
 0x2e2   : > { %3996 = vmatpush3.bf16.msra.mxu1 %v4612_v15 }
 0x2e3   : > { %3997 = vmatprep.subr.bf16.mxu1 %v4613_v45 }
 0x2e5   : > { %3966 = vmatmul.mubr.msk.bf16.gmra.mrb[8].mxu1 %vm2277_vm7, %v5939_v4 }
 0x2e6   : > { %3969 = vmatprep.mubr.msk.bf16.mxu1 %vm2277_vm7, %v5942_v21  ;;  %3998 = vmatpush3.bf16.msra.mxu1 %v4613_v45 }
 0x2e7   : > { %3999 = vmatprep.subr.bf16.mxu1 %v4614_v39 }
 0x2ea   : > { %4000 = vmatpush3.bf16.msra.mxu1 %v4614_v39 }
 0x2eb   : > { %4053 = vmatprep.subr.bf16.mxu1 %v6817_v59 }
 0x2ed   : > { %3970 = vmatmul.mubr.msk.bf16.gmra.mrb[12].mxu1 %vm2277_vm7, %v5960_v56 }
 0x2ee   : > { %3973 = vmatprep.mubr.msk.bf16.mxu1 %vm2277_vm7, %v5962_v51 }
 0x2f5   : > { %3974 = vmatmul.mubr.msk.bf16.gmra.mrb[16].mxu1 %vm2277_vm7, %v5980_v20 }
 0x2f6   : > { %3977 = vmatprep.mubr.msk.bf16.mxu1 %vm2277_vm7, %v5982_v27 }
 0x2fd   : > { %3978 = vmatmul.mubr.msk.bf16.gmra.mrb[20].mxu1 %vm2277_vm7, %v6000_v22 }
 0x2fe   : > { %3981 = vmatprep.mubr.msk.bf16.mxu1 %vm2277_vm7, %v6002_v41 }
 0x305   : > { %3982 = vmatmul.mubr.msk.bf16.gmra.mrb[24].mxu1 %vm2277_vm7, %v6020_v50 }
 0x306   : > { %3985 = vmatprep.mubr.msk.bf16.mxu1 %vm2277_vm7, %v6022_v61 }
 0x30d   : > { %3986 = vmatmul.mubr.msk.bf16.gmra.mrb[28].mxu1 %vm2277_vm7, %v2214_v31 }
 0x30e   : > { %4001 = vmatprep.mubr.msk.bf16.mxu1 %vm2277_vm7, %v5880_v38  ;;  %v4615_v38 = vld [vmem:[%s6723_s3] sm:$0xff]  }
 0x30f   : > { %4034 = vmatpush3.bf16.msra.mxu0 %v4615_v38 }
 0x310   : > { %4035 = vmatprep.subr.bf16.mxu0 %v6817_v59 }
 0x315   : > { %4002 = vmatmul.mubr.msk.bf16.vlgmr.msra.gmra.mrb[0].mxu1 %vm2277_vm7, %v5908_v28  ;;  %v4616_v28 = vld [vmem:[%s6723_s3 + $0x8] sm:$0xff]  }
 0x316   : > { %4005 = vmatprep.mubr.msk.bf16.mxu1 %vm2277_vm7, %v5910_v19  ;;  %4036 = vmatpush3.bf16.msra.mxu0 %v4616_v28  ;;  %v4617_v19 = vld [vmem:[%s6723_s3 + $0x10] sm:$0xff]  }
 0x317   : > { %4037 = vmatprep.subr.bf16.mxu0 %v6817_v59 }
 0x31a   : > { %4038 = vmatpush3.bf16.msra.mxu0 %v4617_v19 }
 0x31b   : > { %4039 = vmatprep.subr.bf16.mxu0 %v6817_v59 }
 0x31d   : > { %4006 = vmatmul.mubr.msk.bf16.gmra.mrb[4].mxu1 %vm2277_vm7, %v5939_v4  ;;  %v4618_v4 = vld [vmem:[%s6723_s3 + $0x18] sm:$0xff]  }
 0x31e   : > { %4009 = vmatprep.mubr.msk.bf16.mxu1 %vm2277_vm7, %v5942_v21  ;;  %4040 = vmatpush3.bf16.msra.mxu0 %v4618_v4  ;;  %v4619_v21 = vld [vmem:[%s6723_s3 + $0x20] sm:$0xff]  }
 0x31f   : > { %4041 = vmatprep.subr.bf16.mxu0 %v6817_v59 }
 0x322   : > { %4042 = vmatpush3.bf16.msra.mxu0 %v4619_v21 }
 0x323   : > { %4043 = vmatprep.subr.bf16.mxu0 %v6817_v59 }
 0x325   : > { %4010 = vmatmul.mubr.msk.bf16.gmra.mrb[8].mxu1 %vm2277_vm7, %v5960_v56  ;;  %v4620_v56 = vld [vmem:[%s6723_s3 + $0x28] sm:$0xff]  }
 0x326   : > { %4013 = vmatprep.mubr.msk.bf16.mxu1 %vm2277_vm7, %v5962_v51  ;;  %4044 = vmatpush3.bf16.msra.mxu0 %v4620_v56  ;;  %v4621_v51 = vld [vmem:[%s6723_s3 + $0x30] sm:$0xff]  }
 0x327   : > { %4045 = vmatprep.subr.bf16.mxu0 %v6817_v59 }
 0x32a   : > { %4046 = vmatpush3.bf16.msra.mxu0 %v4621_v51 }
 0x32b   : > { %4047 = vmatprep.subr.bf16.mxu0 %v6817_v59 }
 0x32d   : > { %4014 = vmatmul.mubr.msk.bf16.gmra.mrb[12].mxu1 %vm2277_vm7, %v5980_v20  ;;  %v4622_v20 = vld [vmem:[%s6723_s3 + $0x38] sm:$0xff]  }
 0x32e   : > { %4017 = vmatprep.mubr.msk.bf16.mxu1 %vm2277_vm7, %v5982_v27  ;;  %v4623_v27 = vld [vmem:[%s6723_s3 + $0x40] sm:$0xff]   ;;  %4048 = vmatpush3.bf16.msra.mxu0 %v4622_v20 }
 0x32f   : > { %4054 = vmatpush3.bf16.msra.mxu1 %v4623_v27 }
 0x330   : > { %4055 = vmatprep.subr.bf16.mxu1 %v6817_v59 }
 0x335   : > { %4018 = vmatmul.mubr.msk.bf16.gmra.mrb[16].mxu1 %vm2277_vm7, %v6000_v22  ;;  %v4624_v22 = vld [vmem:[%s6723_s3 + $0x48] sm:$0xff]  }
 0x336   : > { %4021 = vmatprep.mubr.msk.bf16.mxu1 %vm2277_vm7, %v6002_v41  ;;  %4056 = vmatpush3.bf16.msra.mxu1 %v4624_v22  ;;  %v4625_v41 = vld [vmem:[%s6723_s3 + $0x50] sm:$0xff]  }
 0x337   : > { %4057 = vmatprep.subr.bf16.mxu1 %v6817_v59 }
 0x33a   : > { %4058 = vmatpush3.bf16.msra.mxu1 %v4625_v41 }
 0x33b   : > { %4059 = vmatprep.subr.bf16.mxu1 %v6817_v59 }
 0x33d   : > { %4022 = vmatmul.mubr.msk.bf16.gmra.mrb[20].mxu1 %vm2277_vm7, %v6020_v50 }
 0x33e   : > { %4025 = vmatprep.mubr.msk.bf16.mxu1 %vm2277_vm7, %v6022_v61  ;;  %4060 = vmatpush3.bf16.msra.mxu1 %v4626_v12 }
 0x33f   : > { %4061 = vmatprep.subr.bf16.mxu1 %v6817_v59 }
 0x342   : > { %4062 = vmatpush3.bf16.msra.mxu1 %v4627_v6 }
 0x343   : > { %4063 = vmatprep.subr.bf16.mxu1 %v6817_v59 }
 0x345   : > { %4026 = vmatmul.mubr.msk.bf16.gmra.mrb[24].mxu1 %vm2277_vm7, %v2214_v31 }
 0x346   : > { %4029 = vmatprep.mubr.msk.bf16.mxu1 %vm2277_vm7, %v2215_v58  ;;  %4064 = vmatpush3.bf16.msra.mxu1 %v4628_v25 }
 0x347   : > { %4065 = vmatprep.subr.bf16.mxu1 %v6817_v59 }
 0x34a   : > { %4066 = vmatpush3.bf16.msra.mxu1 %v4629_v60 }
 0x34b   : > { %4067 = vmatprep.subr.bf16.mxu1 %v6817_v59 }
 0x34d   : > { %4030 = vmatmul.mubr.msk.bf16.gmra.mrb[28].mxu1 %vm2277_vm7, %v2199_v42 }
 0x34e   : > { %4069 = vmatprep.mubr.msk.bf16.mxu1 %vm4703_vm8, %v6817_v59  ;;  %4068 = vmatpush3.bf16.msra.mxu1 %v4630_v63 }
 0x3e8   : > { %v4003_v29 = vpop.f32.mrb[0].mxu1 }
 0x3e9   : > { %v2770_v36 = vpop.f32.mrb[1].mxu1  ;;  %v6196_v62 = vadd.f32 %v4003_v29, %v6187_v43 }
 0x3ea   : > { %v4004_v54 = vpop.f32.mrb[2].mxu1  ;;  %v6190_v34 = vadd.f32 %v6187_v43, %v2770_v36 }
 0x3eb   : > { %v2773_v0 = vpop.f32.mrb[3].mxu1  ;;  %v6201_v49 = vadd.f32 %v4004_v54, %v6187_v43 }
 0x3ec   : > { %v6193_v2 = vadd.f32 %v6187_v43, %v2773_v0 }
 0x3ee   : > { %v2969_v59 = vadd.f32 %v6193_v2, %v6190_v34 }
 0x3f0   : > { %v2970_v47 = vadd.f32 %v2969_v59, %v6196_v62  ;;  %v4007_v50 = vpop.f32.mrb[4].mxu1 }
 0x3f1   : > { %v2786_v55 = vpop.f32.mrb[5].mxu1  ;;  %v6213_v16 = vadd.f32 %v4007_v50, %v6187_v43 }
 0x3f2   : > { %v6205_v61 = vadd.f32 %v6187_v43, %v2786_v55  ;;  %v2971_v8 = vadd.f32 %v2970_v47, %v6201_v49  ;;  %v4008_v5 = vpop.f32.mrb[6].mxu1 }
 0x3f3   : > { %v2789_v3 = vpop.f32.mrb[7].mxu1  ;;  %v6217_v57 = vadd.f32 %v4008_v5, %v6187_v43 }
 0x3f4   : > { %v2972_v18 = vadd.f32 %v2971_v8, %v6205_v61  ;;  %v6210_v44 = vadd.f32 %v6187_v43, %v2789_v3 }
 0x3f6   : > { %v2973_v32 = vadd.f32 %v2972_v18, %v6210_v44 }
 0x3f8   : > { %v2974_v1 = vadd.f32 %v2973_v32, %v6213_v16  ;;  %v4011_v13 = vpop.f32.mrb[8].mxu1 }
 0x3f9   : > { %v2802_v9 = vpop.f32.mrb[9].mxu1  ;;  %v6229_v53 = vadd.f32 %v4011_v13, %v6187_v43 }
 0x3fa   : > { %v6221_v48 = vadd.f32 %v6187_v43, %v2802_v9  ;;  %v2975_v17 = vadd.f32 %v2974_v1, %v6217_v57  ;;  %v4012_v46 = vpop.f32.mrb[10].mxu1 }
 0x3fb   : > { %v2805_v14 = vpop.f32.mrb[11].mxu1  ;;  %v6233_v31 = vadd.f32 %v4012_v46, %v6187_v43 }
 0x3fc   : > { %v2976_v24 = vadd.f32 %v2975_v17, %v6221_v48  ;;  %v6226_v33 = vadd.f32 %v6187_v43, %v2805_v14 }
 0x3fe   : > { %v2977_v40 = vadd.f32 %v2976_v24, %v6226_v33 }
 0x400   : > { %v2978_v10 = vadd.f32 %v2977_v40, %v6229_v53  ;;  %v4015_v58 = vpop.f32.mrb[12].mxu1 }
 0x401   : > { %v2818_v11 = vpop.f32.mrb[13].mxu1  ;;  %v6245_v39 = vadd.f32 %v4015_v58, %v6187_v43 }
 0x402   : > { %v6237_v23 = vadd.f32 %v6187_v43, %v2818_v11  ;;  %v2979_v42 = vadd.f32 %v2978_v10, %v6233_v31  ;;  %v4016_v37 = vpop.f32.mrb[14].mxu1 }
 0x403   : > { %v2821_v35 = vpop.f32.mrb[15].mxu1  ;;  %v6249_v28 = vadd.f32 %v4016_v37, %v6187_v43 }
 0x404   : > { %v2980_v15 = vadd.f32 %v2979_v42, %v6237_v23  ;;  %v6242_v45 = vadd.f32 %v6187_v43, %v2821_v35 }
 0x406   : > { %v2981_v38 = vadd.f32 %v2980_v15, %v6242_v45 }
 0x408   : > { %v2982_v19 = vadd.f32 %v2981_v38, %v6245_v39  ;;  %v4019_v4 = vpop.f32.mrb[16].mxu1 }
 0x409   : > { %v2834_v21 = vpop.f32.mrb[17].mxu1  ;;  %v6261_v12 = vadd.f32 %v4019_v4, %v6187_v43 }
 0x40a   : > { %v6253_v56 = vadd.f32 %v6187_v43, %v2834_v21  ;;  %v2983_v51 = vadd.f32 %v2982_v19, %v6249_v28  ;;  %v4020_v20 = vpop.f32.mrb[18].mxu1 }
 0x40b   : > { %v2837_v27 = vpop.f32.mrb[19].mxu1  ;;  %v6265_v25 = vadd.f32 %v4020_v20, %v6187_v43 }
 0x40c   : > { %v2984_v22 = vadd.f32 %v2983_v51, %v6253_v56  ;;  %v6258_v41 = vadd.f32 %v6187_v43, %v2837_v27 }
 0x40e   : > { %v2985_v6 = vadd.f32 %v2984_v22, %v6258_v41 }
 0x410   : > { %v2986_v60 = vadd.f32 %v2985_v6, %v6261_v12  ;;  %v4023_v63 = vpop.f32.mrb[20].mxu1 }
 0x411   : > { %v2850_v29 = vpop.f32.mrb[21].mxu1  ;;  %v6277_v55 = vadd.f32 %v4023_v63, %v6187_v43 }
 0x412   : > { %v6269_v36 = vadd.f32 %v6187_v43, %v2850_v29  ;;  %v2987_v54 = vadd.f32 %v2986_v60, %v6265_v25  ;;  %v4024_v0 = vpop.f32.mrb[22].mxu1 }
 0x413   : > { %v2853_v59 = vpop.f32.mrb[23].mxu1  ;;  %v6281_v5 = vadd.f32 %v4024_v0, %v6187_v43 }
 0x414   : > { %v2988_v47 = vadd.f32 %v2987_v54, %v6269_v36  ;;  %v6274_v50 = vadd.f32 %v6187_v43, %v2853_v59 }
 0x416   : > { %v2989_v8 = vadd.f32 %v2988_v47, %v6274_v50 }
 0x418   : > { %v2990_v3 = vadd.f32 %v2989_v8, %v6277_v55  ;;  %v4027_v18 = vpop.f32.mrb[24].mxu1  ;;  %v3605_v8 = vld [vmem:[%s6724_s4 + $0x2] sm:$0x1] }
 0x419   : > { %v2866_v32 = vpop.f32.mrb[25].mxu1  ;;  %v6293_v24 = vadd.f32 %v4027_v18, %v6187_v43 }
 0x41a   : > { %v6285_v1 = vadd.f32 %v6187_v43, %v2866_v32  ;;  %v2991_v13 = vadd.f32 %v2990_v3, %v6281_v5  ;;  %v4028_v9 = vpop.f32.mrb[26].mxu1 }
 0x41b   : > { %v2869_v17 = vpop.f32.mrb[27].mxu1  ;;  %v6297_v10 = vadd.f32 %v4028_v9, %v6187_v43 }
 0x41c   : > { %v2992_v46 = vadd.f32 %v2991_v13, %v6285_v1  ;;  %v6290_v14 = vadd.f32 %v6187_v43, %v2869_v17 }
 0x41e   : > { %v2993_v40 = vadd.f32 %v2992_v46, %v6290_v14  ;;  %v3630_v46 = vld [vmem:[%s6724_s4 + $0x3] sm:$0x1] }
 0x420   : > { %v2994_v58 = vadd.f32 %v2993_v40, %v6293_v24  ;;  %v4031_v11 = vpop.f32.mrb[28].mxu1 }
 0x421   : > { %v2882_v42 = vpop.f32.mrb[29].mxu1  ;;  %v6309_v21 = vadd.f32 %v4031_v11, %v6187_v43 }
 0x422   : > { %v6301_v37 = vadd.f32 %v6187_v43, %v2882_v42  ;;  %v2995_v35 = vadd.f32 %v2994_v58, %v6297_v10  ;;  %v4032_v15 = vpop.f32.mrb[30].mxu1 }
 0x423   : > { %v2885_v38 = vpop.f32.mrb[31].mxu1  ;;  %v6313_v20 = vadd.f32 %v4032_v15, %v6187_v43 }
 0x424   : > { %v2996_v19 = vadd.f32 %v2995_v35, %v6301_v37  ;;  %v6306_v4 = vadd.f32 %v6187_v43, %v2885_v38  ;;  %v1505_v38 = vlaneseq }
 0x426   : > { %v2997_v51 = vadd.f32 %v2996_v19, %v6306_v4  ;;  %v1506_v19 = vand.u32 127, %v1505_v38 }
 0x428   : > { %v2998_v27 = vadd.f32 %v2997_v51, %v6309_v21  ;;  %vm1507_vm9 = vcmp.ge.s32.totalorder %v1506_v19, 32  ;;  %vm1508_vm10 = vcmp.lt.s32.totalorder %v1506_v19, 64  ;;  %v6829_v19 = vld [vmem:[#allocation14_spill] sm:$0xff] }
 0x429   : > { %vm6323_vm11 = vmand %vm1507_vm9, %vm1508_vm10 }
 0x42a   : > { %v2999_v22 = vadd.f32 %v2998_v27, %v6313_v20 }
 0x42c   : > { %v3000_v6 = vrot.slane %v2999_v22, 4 }
 0x42e   : > { %v3001_v60 = vadd.f32 %v3000_v6, %v2999_v22  ;;  %v3230_v6 = vshrl.u32 %v1505_v38, 7 }
 0x430   : > { %v3002_v63 = vrot.slane %v3001_v60, 2  ;;  %v3231_v38 = vsub.s32 0, %v3230_v6 }
 0x432   : > { %v3003_v29 = vadd.f32 %v3002_v63, %v3001_v60  ;;  %v6843_v60 = vld [vmem:[#allocation28_spill] sm:$0xff]  ;;  %v6845_v63 = vld [vmem:[#allocation30_spill] sm:$0xff] }
 0x434   : > { %v3004_v54 = vrot.slane %v3003_v29, 1 }
 0x436   : > { %v3005_v0 = vadd.f32 %v3004_v54, %v3003_v29 }
 0x438   : > { %v3006_v59 = vmul.f32 0.00390625, %v3005_v0  ;;  %v6820_v0 = vld [vmem:[#allocation5_spill] sm:$0xff] }
 0x43a   : > { %v3007_v47 = vpack.c.bf16 %v3006_v59, %v3006_v59  ;;  %v6833_v59 = vld [vmem:[#allocation18_spill] sm:$0xff] }
 0x43c   : > { %4050 = vmatmul.mubr.bf16.vlgmr.msra.gmra.mrb[32].mxu0 %v3007_v47  ;;  %v6821_v47 = vld [vmem:[#allocation6_spill] sm:$0xff] }
 0x50f   : > { %v3108_v3 = vpop.f32.mrb[32].mxu0 }
 0x510   : > { %v3109_v43 = vadd.f32 %v3605_v8, %v3108_v3  ;;  %v4051_v18 = vpop.f32.mrb[33].mxu0  ;;  %v6822_v3 = vld [vmem:[#allocation7_spill] sm:$0xff] }
 0x511   : > { %v3111_v32 = vpop.f32.mrb[34].mxu0  ;;  %v6823_v18 = vld [vmem:[#allocation8_spill] sm:$0xff] }
 0x512   : > { %v3114_v13 = vmax.f32 %v3109_v43, 0.0  ;;  %v4052_v9 = vpop.f32.mrb[35].mxu0  ;;  %v6847_v43 = vld [vmem:[#allocation32_spill] sm:$0xff] }
 0x514   : > { %v3115_v17 = vpack.c.bf16 %v3114_v13, %v3114_v13  ;;  %v6824_v13 = vld [vmem:[#allocation9_spill] sm:$0xff] }
 0x516   : > { %4070 = vmatmul.mubr.bf16.vlgmr.msra.gmra.mrb[32].mxu1 %v3115_v17  ;;  %v6825_v17 = vld [vmem:[#allocation10_spill] sm:$0xff] }
 0x5e9   : > { %v3217_v40 = vpop.f32.mrb[32].mxu1 }
 0x5ea   : > { %v3218_v58 = vadd.f32 %v3630_v46, %v3217_v40  ;;  %v4071_v11 = vpop.f32.mrb[33].mxu1  ;;  %v6826_v40 = vld [vmem:[#allocation11_spill] sm:$0xff]  ;;  %v6831_v46 = vld [vmem:[#allocation16_spill] sm:$0xff] }
 0x5eb   : > { %v3220_v42 = vpop.f32.mrb[34].mxu1  ;;  %v6827_v11 = vld [vmem:[#allocation12_spill] sm:$0xff] }
 0x5ec   : > { %v3639_v35 = vmul.f32 -1.442695, %v3218_v58  ;;  %v4072_v15 = vpop.f32.mrb[35].mxu1 }
 0x5ee   : > { %4631 = vpow2.f32 %v3639_v35  ;;  %v6828_v35 = vld [vmem:[#allocation13_spill] sm:$0xff] }
 0x5f8   : > { %v4632_v51 = vpop.eup %4631 }
 0x5f9   : > { %v3226_v27 = vadd.f32 1.0, %v4632_v51 }
 0x5fb   : > { %4633 = vrcp.f32 %v3226_v27  ;;  %v6830_v27 = vld [vmem:[#allocation15_spill] sm:$0xff] }
 0x605   : > { %v4634_v29 = vpop.eup %4633 }
 0x606   : > { %v3232_v54 = vrot.slane %v4634_v29, %v3231_v38 }
 0x608   : > { %v3233_v8 = vmul.f32 %v3232_v54, %v6190_v34  ;;  %v3234_v29 = vmul.f32 %v3232_v54, %v6193_v2  ;;  %v3235_v38 = vmul.f32 %v3232_v54, %v6196_v62  ;;  %v3236_v51 = vmul.f32 %v3232_v54, %v6201_v49 }
 0x609   : > { %v3237_v6 = vmul.f32 %v3232_v54, %v6205_v61  ;;  %v3238_v9 = vmul.f32 %v3232_v54, %v6210_v44  ;;  %v3239_v32 = vmul.f32 %v3232_v54, %v6213_v16  ;;  %v3240_v58 = vmul.f32 %v3232_v54, %v6217_v57 }
 0x60a   : > { %v3241_v15 = vmul.f32 %v3232_v54, %v6221_v48  ;;  %v3242_v42 = vmul.f32 %v3232_v54, %v6226_v33  ;;  %v3243_v34 = vmul.f32 %v3232_v54, %v6229_v53  ;;  %v3244_v2 = vmul.f32 %v3232_v54, %v6233_v31 }
 0x60b   : > { %v3245_v62 = vmul.f32 %v3232_v54, %v6237_v23  ;;  %v3246_v49 = vmul.f32 %v3232_v54, %v6242_v45  ;;  %v3247_v61 = vmul.f32 %v3232_v54, %v6245_v39  ;;  %v3248_v44 = vmul.f32 %v3232_v54, %v6249_v28 }
 0x60c   : > { %v3249_v16 = vmul.f32 %v3232_v54, %v6253_v56  ;;  %v3250_v57 = vmul.f32 %v3232_v54, %v6258_v41  ;;  %v3251_v48 = vmul.f32 %v3232_v54, %v6261_v12  ;;  %v3252_v33 = vmul.f32 %v3232_v54, %v6265_v25 }
 0x60d   : > { %v3253_v53 = vmul.f32 %v3232_v54, %v6269_v36  ;;  %v3254_v31 = vmul.f32 %v3232_v54, %v6274_v50  ;;  %v3255_v23 = vmul.f32 %v3232_v54, %v6277_v55  ;;  %v3256_v45 = vmul.f32 %v3232_v54, %v6281_v5 }
 0x60e   : > { %v3257_v39 = vmul.f32 %v3232_v54, %v6285_v1  ;;  %v3258_v28 = vmul.f32 %v3232_v54, %v6290_v14  ;;  %v3259_v56 = vmul.f32 %v3232_v54, %v6293_v24  ;;  %v3260_v41 = vmul.f32 %v3232_v54, %v6297_v10 }
 0x60f   : > { %v3261_v12 = vmul.f32 %v3232_v54, %v6301_v37  ;;  %v3262_v25 = vmul.f32 %v3232_v54, %v6306_v4  ;;  %v3263_v36 = vmul.f32 %v3232_v54, %v6309_v21  ;;  %v3264_v50 = vmul.f32 %v3232_v54, %v6313_v20 }
 0x610   : > { %v6848_v55 = vsel %vm6323_vm11, %v5388_v52, 0.0  ;;  %v6849_v1 = vsel %vm6323_vm11, %v5396_v7, 0.0  ;;  %v6850_v24 = vsel %vm6323_vm11, %v5385_v26, 0.0  ;;  %v6851_v37 = vsel %vm6323_vm11, %v5392_v30, 0.0 }
 0x611   : > { %v3265_v5 = vadd.f32 %v3233_v8, %v6848_v55  ;;  %v3266_v14 = vadd.f32 %v3234_v29, %v6849_v1  ;;  %v3267_v10 = vadd.f32 %v3235_v38, %v6850_v24  ;;  %v3268_v4 = vadd.f32 %v3236_v51, %v6851_v37 }
 0x612   : > { %v6852_v52 = vsel %vm6323_vm11, %v6821_v47, 0.0  ;;  %v6853_v7 = vsel %vm6323_vm11, %v6823_v18, 0.0  ;;  %v6854_v26 = vsel %vm6323_vm11, %v6820_v0, 0.0  ;;  %v6855_v30 = vsel %vm6323_vm11, %v6822_v3, 0.0 }
 0x613   : > { %v3269_v21 = vadd.f32 %v3237_v6, %v6852_v52  ;;  %v3270_v20 = vadd.f32 %v3238_v9, %v6853_v7  ;;  %v3271_v54 = vadd.f32 %v3239_v32, %v6854_v26  ;;  %v3272_v8 = vadd.f32 %v3240_v58, %v6855_v30 }
 0x614   : > { %v6856_v47 = vsel %vm6323_vm11, %v6825_v17, 0.0  ;;  %v6857_v18 = vsel %vm6323_vm11, %v6827_v11, 0.0  ;;  %v6858_v0 = vsel %vm6323_vm11, %v6824_v13, 0.0  ;;  %v6859_v3 = vsel %vm6323_vm11, %v6826_v40, 0.0 }
 0x615   : > { %v3273_v51 = vadd.f32 %v3241_v15, %v6856_v47  ;;  %v3274_v9 = vadd.f32 %v3242_v42, %v6857_v18  ;;  %v3275_v32 = vadd.f32 %v3243_v34, %v6858_v0  ;;  %v3276_v58 = vadd.f32 %v3244_v2, %v6859_v3 }
 0x616   : > { %v6860_v17 = vsel %vm6323_vm11, %v6829_v19, 0.0  ;;  %v6861_v11 = vsel %vm6323_vm11, %v6831_v46, 0.0  ;;  %v6862_v13 = vsel %vm6323_vm11, %v6828_v35, 0.0  ;;  %v6863_v40 = vsel %vm6323_vm11, %v6830_v27, 0.0  ;;  %v6865_v46 = vld [vmem:[#allocation20_spill] sm:$0xff]  ;;  %v6867_v35 = vld [vmem:[#allocation17_spill] sm:$0xff] }
 0x617   : > { %v3277_v15 = vadd.f32 %v3245_v62, %v6860_v17  ;;  %v3278_v42 = vadd.f32 %v3246_v49, %v6861_v11  ;;  %v3279_v6 = vadd.f32 %v3247_v61, %v6862_v13  ;;  %v3280_v29 = vadd.f32 %v3248_v44, %v6863_v40  ;;  %v6869_v49 = vld [vmem:[#allocation19_spill] sm:$0xff] }
 0x618   : > { %v6864_v19 = vsel %vm6323_vm11, %v6833_v59, 0.0  ;;  %v6866_v34 = vsel %vm6323_vm11, %v6865_v46, 0.0  ;;  %v6868_v62 = vsel %vm6323_vm11, %v6867_v35, 0.0  ;;  %v6870_v61 = vsel %vm6323_vm11, %v6869_v49, 0.0  ;;  %v6871_v59 = vld [vmem:[#allocation22_spill] sm:$0xff] }
 0x619   : > { %v6526_v38 = vadd.f32 %v3249_v16, %v6864_v19  ;;  %v6532_v2 = vadd.f32 %v3250_v57, %v6866_v34  ;;  %v6538_v27 = vadd.f32 %v3251_v48, %v6868_v62  ;;  %v6544_v44 = vadd.f32 %v3252_v33, %v6870_v61  ;;  %v6873_v57 = vld [vmem:[#allocation24_spill] sm:$0xff]  ;;  %v6875_v48 = vld [vmem:[#allocation21_spill] sm:$0xff]  ;;  %v6877_v33 = vld [vmem:[#allocation23_spill] sm:$0xff] }
 0x61a   : > { %v6872_v16 = vsel %vm6323_vm11, %v6871_v59, 0.0  ;;  %v6874_v1 = vsel %vm6323_vm11, %v6873_v57, 0.0  ;;  %v6876_v37 = vsel %vm6323_vm11, %v6875_v48, 0.0  ;;  %v6878_v7 = vsel %vm6323_vm11, %v6877_v33, 0.0 }
 0x61b   : > { %v6550_v55 = vadd.f32 %v3253_v53, %v6872_v16  ;;  %v6556_v24 = vadd.f32 %v3254_v31, %v6874_v1  ;;  %v6562_v52 = vadd.f32 %v3255_v23, %v6876_v37  ;;  %v6568_v26 = vadd.f32 %v3256_v45, %v6878_v7  ;;  %v6879_v53 = vld [vmem:[#allocation26_spill] sm:$0xff]  ;;  %v6882_v23 = vld [vmem:[#allocation25_spill] sm:$0xff]  ;;  %v6884_v45 = vld [vmem:[#allocation27_spill] sm:$0xff] }
 0x61c   : > { %v6880_v30 = vsel %vm6323_vm11, %v6879_v53, 0.0  ;;  %v6881_v31 = vsel %vm6323_vm11, %v6843_v60, 0.0  ;;  %v6883_v0 = vsel %vm6323_vm11, %v6882_v23, 0.0  ;;  %v6885_v17 = vsel %vm6323_vm11, %v6884_v45, 0.0 }
 0x61d   : > { %v6574_v47 = vadd.f32 %v3257_v39, %v6880_v30  ;;  %v6580_v18 = vadd.f32 %v3258_v28, %v6881_v31  ;;  %v6586_v3 = vadd.f32 %v3259_v56, %v6883_v0  ;;  %v6592_v11 = vadd.f32 %v3260_v41, %v6885_v17  ;;  %v6888_v56 = vld [vmem:[#allocation29_spill] sm:$0xff]  ;;  %v6890_v41 = vld [vmem:[#allocation31_spill] sm:$0xff] }
 0x61e   : > { %v6886_v39 = vsel %vm6323_vm11, %v6845_v63, 0.0  ;;  %v6887_v60 = vsel %vm6323_vm11, %v6847_v43, 0.0  ;;  %v6889_v40 = vsel %vm6323_vm11, %v6888_v56, 0.0  ;;  %v6891_v46 = vsel %vm6323_vm11, %v6890_v41, 0.0 }
 0x61f   : > { %v6598_v13 = vadd.f32 %v3261_v12, %v6886_v39  ;;  %v6604_v28 = vadd.f32 %v3262_v25, %v6887_v60  ;;  %v6610_v19 = vadd.f32 %v3263_v36, %v6889_v40  ;;  %v6616_v34 = vadd.f32 %v3264_v50, %v6891_v46 }
 0x620   : > { %v3297_v63 = vmax.f32 %v3265_v5, 0.0  ;;  %v3298_v12 = vmax.f32 %v3266_v14, 0.0  ;;  %v3299_v35 = vmax.f32 %v3267_v10, 0.0  ;;  %v3300_v62 = vmax.f32 %v3268_v4, 0.0 }
 0x621   : > { %v3301_v49 = vmax.f32 %v3269_v21, 0.0  ;;  %v3302_v43 = vmax.f32 %v3270_v20, 0.0  ;;  %v3303_v25 = vmax.f32 %v3271_v54, 0.0  ;;  %v3304_v61 = vmax.f32 %v3272_v8, 0.0 }
 0x622   : > { %v3305_v59 = vmax.f32 %v3273_v51, 0.0  ;;  %v3306_v16 = vmax.f32 %v3274_v9, 0.0  ;;  %v3307_v57 = vmax.f32 %v3275_v32, 0.0  ;;  %v3308_v36 = vmax.f32 %v3276_v58, 0.0  ;;  %3329 = vst [vmem:[%s6618_s14] sm:$0xff] %v3297_v63  ;;  %3330 = vst [vmem:[%s6618_s14 + $0x8] sm:$0xff] %v3298_v12 }
 0x623   : > { %3331 = vst [vmem:[%s6618_s14 + $0x10] sm:$0xff] %v3299_v35  ;;  %3332 = vst [vmem:[%s6618_s14 + $0x18] sm:$0xff] %v3300_v62  ;;  %v3309_v22 = vmax.f32 %v3277_v15, 0.0  ;;  %v3310_v50 = vmax.f32 %v3278_v42, 0.0  ;;  %v3311_v5 = vmax.f32 %v3279_v6, 0.0  ;;  %v3312_v14 = vmax.f32 %v3280_v29, 0.0 }
 0x624   : > { %3333 = vst [vmem:[%s6618_s14 + $0x20] sm:$0xff] %v3301_v49  ;;  %3334 = vst [vmem:[%s6618_s14 + $0x28] sm:$0xff] %v3302_v43  ;;  %v3313_v10 = vmax.f32 %v6526_v38, 0.0  ;;  %v3314_v4 = vmax.f32 %v6532_v2, 0.0  ;;  %v3315_v21 = vmax.f32 %v6538_v27, 0.0  ;;  %v3316_v20 = vmax.f32 %v6544_v44, 0.0 }
 0x625   : > { %3335 = vst [vmem:[%s6618_s14 + $0x30] sm:$0xff] %v3303_v25  ;;  %3336 = vst [vmem:[%s6618_s14 + $0x38] sm:$0xff] %v3304_v61  ;;  %v3317_v54 = vmax.f32 %v6550_v55, 0.0  ;;  %v3318_v8 = vmax.f32 %v6556_v24, 0.0  ;;  %v3319_v51 = vmax.f32 %v6562_v52, 0.0  ;;  %v3320_v9 = vmax.f32 %v6568_v26, 0.0 }
 0x626   : > { %3337 = vst [vmem:[%s6618_s14 + $0x40] sm:$0xff] %v3305_v59  ;;  %3338 = vst [vmem:[%s6618_s14 + $0x48] sm:$0xff] %v3306_v16  ;;  %v3321_v32 = vmax.f32 %v6574_v47, 0.0  ;;  %v3322_v58 = vmax.f32 %v6580_v18, 0.0  ;;  %v3323_v15 = vmax.f32 %v6586_v3, 0.0  ;;  %v3324_v42 = vmax.f32 %v6592_v11, 0.0 }
 0x627   : > { %3339 = vst [vmem:[%s6618_s14 + $0x50] sm:$0xff] %v3307_v57  ;;  %3340 = vst [vmem:[%s6618_s14 + $0x58] sm:$0xff] %v3308_v36  ;;  %v3325_v6 = vmax.f32 %v6598_v13, 0.0  ;;  %v3326_v29 = vmax.f32 %v6604_v28, 0.0  ;;  %v3327_v38 = vmax.f32 %v6610_v19, 0.0  ;;  %v3328_v2 = vmax.f32 %v6616_v34, 0.0 }
 0x628   : > { %3341 = vst [vmem:[%s6618_s14 + $0x60] sm:$0xff] %v3309_v22  ;;  %3342 = vst [vmem:[%s6618_s14 + $0x68] sm:$0xff] %v3310_v50 }
 0x629   : > { %3343 = vst [vmem:[%s6618_s14 + $0x70] sm:$0xff] %v3311_v5  ;;  %3344 = vst [vmem:[%s6618_s14 + $0x78] sm:$0xff] %v3312_v14 }
 0x62a   : > { %3345 = vst [vmem:[%s6618_s14 + $0x80] sm:$0xff] %v3313_v10  ;;  %3346 = vst [vmem:[%s6618_s14 + $0x88] sm:$0xff] %v3314_v4 }
 0x62b   : > { %3347 = vst [vmem:[%s6618_s14 + $0x90] sm:$0xff] %v3315_v21  ;;  %3348 = vst [vmem:[%s6618_s14 + $0x98] sm:$0xff] %v3316_v20 }
 0x62c   : > { %3349 = vst [vmem:[%s6618_s14 + $0xa0] sm:$0xff] %v3317_v54  ;;  %3350 = vst [vmem:[%s6618_s14 + $0xa8] sm:$0xff] %v3318_v8 }
 0x62d   : > { %3351 = vst [vmem:[%s6618_s14 + $0xb0] sm:$0xff] %v3319_v51  ;;  %3352 = vst [vmem:[%s6618_s14 + $0xb8] sm:$0xff] %v3320_v9 }
 0x62e   : > { %3353 = vst [vmem:[%s6618_s14 + $0xc0] sm:$0xff] %v3321_v32  ;;  %3354 = vst [vmem:[%s6618_s14 + $0xc8] sm:$0xff] %v3322_v58 }
 0x62f   : > { %3355 = vst [vmem:[%s6618_s14 + $0xd0] sm:$0xff] %v3323_v15  ;;  %3356 = vst [vmem:[%s6618_s14 + $0xd8] sm:$0xff] %v3324_v42 }
 0x630   : > { %3357 = vst [vmem:[%s6618_s14 + $0xe0] sm:$0xff] %v3325_v6  ;;  %3358 = vst [vmem:[%s6618_s14 + $0xe8] sm:$0xff] %v3326_v29 }
 0x631   : > { %3359 = vst [vmem:[%s6618_s14 + $0xf0] sm:$0xff] %v3327_v38  ;;  %3360 = vst [vmem:[%s6618_s14 + $0xf8] sm:$0xff] %v3328_v2 }
 0x632   : > { %4648 = shalt.err (!%p4645_p3)
}
 0x633   : > { %s4649_s8 = scalar_lea.hbm %s6657_s23, 4096  ;;  %s4653_s11 = scalar_lea.hbm %s6725_s5, 8192 }
 0x634   : > { %p4650_p4 = scmp.ne.s32.totalorder %s6657_s23, %s4649_s8  ;;  %p4654_p9 = scmp.lt.u32.totalorder %s6657_s23, %s6725_s5 }
 0x635   : > { %p4655_p10 = scmp.lt.u32.totalorder %s4653_s11, %s4649_s8  ;;  %p4657_p12 = scmp.lt.u32.totalorder %s4649_s8, %s6657_s23 }
 0x636   : > { %p4651_p7 = pnand %p4650_p4, %p4775_p5 }
 0x637   : > { %p4656_p11 = por %p4655_p10, %p4654_p9 }
 0x638   : > { %p4652_p8 = pneg %p4651_p7 }
 0x639   : > { %p4658_p13 = por %p4657_p12, %p4656_p11 }
 0x63b   : > { %p4659_p0 = pnand %p4658_p13, %p4652_p8 }
 0x63d   : > { %4662 = shalt.err (!%p4659_p0)
}
 0x63e   : > { %s4705_s14 = smov 128   ;;  %s4706_s15 = smov 8  }
 0x63f   : > { %4202 = dma.vmem_to_hbm [thread:$0]  (%p4775_p5), %s6659_s16, 4096, %s6657_s23, %s6679_s25, %s4705_s14, %s4705_s14, %s4706_s15  }
 0x640 PF: > { %p4208_p1 = scmp.ge.s32.totalorder %s4697_s21, 2  ;;  %s3390_s22 = sand.u32 1, %s4685_s18  }
 0x641   : > { %s3391_s17 = scalar_lea.sflag [#allocation3], %s3390_s22 }
 0x642   : > { %p4205_p2 = pnand %p4208_p1, %p4779_p6 }
 0x644   : > { %4680 = dma.done.wait (!%p4205_p2), %s3391_s17, 4096  }
 0x645   : > { %4682 = vsyncadd (!%p4205_p2), %s3391_s17, 4294963200  ;;  %p15_p3 = scmp.ge.s32.totalorder %s4762_s24, 4   ;;  %s6892_s18 = smov %s4689_s19 }
 0x646   : > { %s6893_s19 = smov %s4693_s20  ;;  %s6894_s20 = smov %s4773_s27 }
 0x647   : > { %s6895_s21 = smov %s4762_s24  ;;  %17 = sbr.rel (!%p15_p3) target bundleno = 3 (0x3), region = 83 }
 0x64e   :  { %3396 = vsyncpa [#allocation3], 1 }
 0x64f   :  { %3398 = vsyncpa [#allocation3 + $0x1], 1 }

</bundles_post_ra>
